<compile_context>
chip_gen: v7x
topology: tpu7x:2x2x1
jax: 0.10.0
libtpu: 0.0.40
codegen_flags: <defaults>
</compile_context>

<pallas_src>
import jax
import jax.numpy as jnp
from jax import lax
from jax.experimental import pallas as pl
from jax.experimental.pallas import tpu as pltpu


def _round_up(x, m):
    return ((x + m - 1) // m) * m


# -----------------------------------------------------------------------------
# Kernel 1: per-mode complex channel contraction (mode axis on lanes, VPU MAC)
#   out[b, o, m] = sum_i x[b, i, m] * w[i, o, m]   (complex)
# -----------------------------------------------------------------------------
def _spectral_mul_kernel(xr_ref, xi_ref, wr_ref, wi_ref, or_ref, oi_ref):
    cin = xr_ref.shape[1]

    xr0 = xr_ref[:, 0:1, :]            # (B, 1, T)
    xi0 = xi_ref[:, 0:1, :]
    wr0 = wr_ref[0:1, :, :]            # (1, Cout, T)
    wi0 = wi_ref[0:1, :, :]
    acc_r = xr0 * wr0 - xi0 * wi0      # (B, Cout, T)
    acc_i = xr0 * wi0 + xi0 * wr0

    for i in range(1, cin):            # static unroll over Cin
        xr_i = xr_ref[:, i:i + 1, :]
        xi_i = xi_ref[:, i:i + 1, :]
        wr_i = wr_ref[i:i + 1, :, :]
        wi_i = wi_ref[i:i + 1, :, :]
        acc_r = acc_r + xr_i * wr_i - xi_i * wi_i
        acc_i = acc_i + xr_i * wi_i + xi_i * wr_i

    or_ref[...] = acc_r
    oi_ref[...] = acc_i


def compl_mul_pallas(xr, xi, wr, wi):
    """xr/xi: (B, Cin, M); wr/wi: (Cin, Cout, M)  ->  real/imag (B, Cout, M)."""
    B, Cin, M = xr.shape
    Cout = wr.shape[1]

    m_pad = _round_up(M, 128)
    tile_m = m_pad if m_pad <= 1024 else 512
    m_pad = _round_up(m_pad, tile_m)

    pad = ((0, 0), (0, 0), (0, m_pad - M))
    xr = jnp.pad(xr, pad)
    xi = jnp.pad(xi, pad)
    wr = jnp.pad(wr, pad)
    wi = jnp.pad(wi, pad)

    x_spec = pl.BlockSpec((B, Cin, tile_m), lambda m: (0, 0, m))
    w_spec = pl.BlockSpec((Cin, Cout, tile_m), lambda m: (0, 0, m))
    o_spec = pl.BlockSpec((B, Cout, tile_m), lambda m: (0, 0, m))

    out_r, out_i = pl.pallas_call(
        _spectral_mul_kernel,
        out_shape=(jax.ShapeDtypeStruct((B, Cout, m_pad), jnp.float32),
                   jax.ShapeDtypeStruct((B, Cout, m_pad), jnp.float32)),
        grid=(m_pad // tile_m,),
        in_specs=[x_spec, x_spec, w_spec, w_spec],
        out_specs=(o_spec, o_spec),
        compiler_params=pltpu.CompilerParams(
            dimension_semantics=("parallel",)),
    )(xr, xi, wr, wi)
    return out_r[:, :, :M], out_i[:, :, :M]


# -----------------------------------------------------------------------------
# Kernel 2: fused 1x1 Conv1d (channel mix) + residual add + tanh
#   out[b, o, p] = tanh( x1[b, o, p] + sum_i W[o, i] * x[b, i, p] + bias[o] )
# -----------------------------------------------------------------------------
def _linear_add_tanh_kernel(w_ref, b_ref, x_ref, x1_ref, o_ref):
    cin = x_ref.shape[1]
    x = x_ref[0]                                 # (Cin, TP)
    acc = x1_ref[0] + b_ref[...]                 # (Cout, TP), bias lane-broadcast
    for i in range(cin):                         # static unroll over Cin
        acc = acc + w_ref[:, i:i + 1] * x[i:i + 1, :]
    o_ref[0] = jnp.tanh(acc)                     # EUP


def linear_add_tanh_pallas(x_flat, w, b, x1_flat, *, tile_p=512):
    B, Cin, P = x_flat.shape
    Cout = w.shape[0]

    p_pad = _round_up(P, 128)
    tile_p = min(tile_p, p_pad)
    p_pad = _round_up(p_pad, tile_p)

    x_flat = jnp.pad(x_flat, ((0, 0), (0, 0), (0, p_pad - P)))
    x1_flat = jnp.pad(x1_flat, ((0, 0), (0, 0), (0, p_pad - P)))
    b2 = b.reshape(Cout, 1)

    out = pl.pallas_call(
        _linear_add_tanh_kernel,
        out_shape=jax.ShapeDtypeStruct((B, Cout, p_pad), jnp.float32),
        grid=(B, p_pad // tile_p),
        in_specs=[
            pl.BlockSpec((Cout, Cin), lambda bb, pp: (0, 0)),
            pl.BlockSpec((Cout, 1), lambda bb, pp: (0, 0)),
            pl.BlockSpec((1, Cin, tile_p), lambda bb, pp: (bb, 0, pp)),
            pl.BlockSpec((1, Cout, tile_p), lambda bb, pp: (bb, 0, pp)),
        ],
        out_specs=pl.BlockSpec((1, Cout, tile_p), lambda bb, pp: (bb, 0, pp)),
        compiler_params=pltpu.CompilerParams(
            dimension_semantics=("parallel", "parallel")),
    )(w, b2, x_flat, x1_flat)
    return out[:, :, :P]


# -----------------------------------------------------------------------------
# SpectralConv3d forward
# -----------------------------------------------------------------------------
def spectral_conv3d(x, w_real, w_imag, m1, m2, m3):
    """x: (B, Cin, Nx, Ny, Nz); w_real/w_imag: (4, Cin, Cout, m1, m2, m3)."""
    B, Cin, Nx, Ny, Nz = x.shape
    Cout = w_real.shape[2]

    # TODO(synk): no Pallas FFT primitive — rfftn / irfftn use jnp.fft.
    x_ft = jnp.fft.rfftn(x.astype(jnp.float32), axes=(2, 3, 4))   # complex64
    Nzf = x_ft.shape[-1]
    zc = min(Nzf, m3)

    # Gather the four frequency corner blocks (only the zc live z-modes; the
    # PyTorch zero-padded z-modes contribute exactly zero and are dropped).
    corners = jnp.stack([
        x_ft[:, :, :m1, :m2, :zc],
        x_ft[:, :, Nx - m1:, :m2, :zc],
        x_ft[:, :, :m1, Ny - m2:, :zc],
        x_ft[:, :, Nx - m1:, Ny - m2:, :zc],
    ], axis=2)                                      # (B, Cin, 4, m1, m2, zc)

    Mtot = 4 * m1 * m2 * zc
    c = corners.reshape(B, Cin, Mtot)
    xr = jnp.real(c).astype(jnp.float32)
    xi = jnp.imag(c).astype(jnp.float32)

    # Weights -> (Cin, Cout, mode) with matching (corner, x, y, z) flattening.
    wr = jnp.transpose(w_real[..., :zc], (1, 2, 0, 3, 4, 5)).reshape(Cin, Cout, Mtot)
    wi = jnp.transpose(w_imag[..., :zc], (1, 2, 0, 3, 4, 5)).reshape(Cin, Cout, Mtot)

    out_r, out_i = compl_mul_pallas(xr, xi, wr, wi)   # (B, Cout, Mtot)
    res = lax.complex(out_r, out_i).reshape(B, Cout, 4, m1, m2, zc)

    # Scatter corners into the full frequency tensor (glue, plain JAX).
    out_ft = jnp.zeros((B, Cout, Nx, Ny, Nzf), dtype=jnp.complex64)
    out_ft = out_ft.at[:, :, :m1, :m2, :zc].set(res[:, :, 0])
    out_ft = out_ft.at[:, :, Nx - m1:, :m2, :zc].set(res[:, :, 1])
    out_ft = out_ft.at[:, :, :m1, Ny - m2:, :zc].set(res[:, :, 2])
    out_ft = out_ft.at[:, :, Nx - m1:, Ny - m2:, :zc].set(res[:, :, 3])

    return jnp.fft.irfftn(out_ft, s=(Nx, Ny, Nz),
                          axes=(2, 3, 4)).astype(jnp.float32)


def fourier_block(x, w_real, w_imag, conv_w, conv_b, m1, m2, m3):
    """Full FourierBlock forward with act='tanh'."""
    B, Cin, Nx, Ny, Nz = x.shape
    Cout = conv_w.shape[0]
    x1 = spectral_conv3d(x, w_real, w_imag, m1, m2, m3)   # (B, Cout, Nx, Ny, Nz)
    P = Nx * Ny * Nz
    out = linear_add_tanh_pallas(
        x.reshape(B, Cin, P).astype(jnp.float32),
        conv_w.astype(jnp.float32), conv_b.astype(jnp.float32),
        x1.reshape(B, Cout, P))
    return out.reshape(B, Cout, Nx, Ny, Nz)


# -----------------------------------------------------------------------------
# Pure-JAX reference mirroring the PyTorch forward
# -----------------------------------------------------------------------------
def _reference(x, w_real, w_imag, conv_w, conv_b, m1, m2, m3):
    B, Cin, Nx, Ny, Nz = x.shape
    Cout = conv_w.shape[0]
    x_ft = jnp.fft.rfftn(x, axes=(2, 3, 4))
    Nzf = x_ft.shape[-1]
    zc = min(Nzf, m3)
    w = w_real + 1j * w_imag                      # (4, Cin, Cout, m1, m2, m3)

    def corner(xs, ys, idx):
        coeff = jnp.zeros((B, Cin, m1, m2, m3), dtype=jnp.complex64)
        coeff = coeff.at[..., :zc].set(x_ft[:, :, xs, ys, :zc])
        return jnp.einsum('bixyz,ioxyz->boxyz', coeff, w[idx],
                          precision=lax.Precision.HIGHEST)

    out_ft = jnp.zeros((B, Cout, Nx, Ny, Nzf), dtype=jnp.complex64)
    out_ft = out_ft.at[:, :, :m1, :m2, :zc].set(
        corner(slice(0, m1), slice(0, m2), 0)[..., :zc])
    out_ft = out_ft.at[:, :, Nx - m1:, :m2, :zc].set(
        corner(slice(Nx - m1, Nx), slice(0, m2), 1)[..., :zc])
    out_ft = out_ft.at[:, :, :m1, Ny - m2:, :zc].set(
        corner(slice(0, m1), slice(Ny - m2, Ny), 2)[..., :zc])
    out_ft = out_ft.at[:, :, Nx - m1:, Ny - m2:, :zc].set(
        corner(slice(Nx - m1, Nx), slice(Ny - m2, Ny), 3)[..., :zc])
    x1 = jnp.fft.irfftn(out_ft, s=(Nx, Ny, Nz), axes=(2, 3, 4))

    x2 = jnp.einsum('oi,bip->bop', conv_w, x.reshape(B, Cin, -1),
                    precision=lax.Precision.HIGHEST) + conv_b[None, :, None]
    return jnp.tanh(x1 + x2.reshape(B, Cout, Nx, Ny, Nz))


if __name__ == "__main__":
    B, Cin, Cout = 2, 4, 8
    Nx, Ny, Nz = 16, 16, 16
    m1 = m2 = m3 = 4

    key = jax.random.PRNGKey(0)
    kx, kwr, kwi, kcw, kcb = jax.random.split(key, 5)

    x = jax.random.normal(kx, (B, Cin, Nx, Ny, Nz), dtype=jnp.float32)

    # scale * rand(...) complex weights, 4 corner weight tensors stacked.
    scale = 1.0 / (Cin * Cout)
    w_real = scale * jax.random.uniform(kwr, (4, Cin, Cout, m1, m2, m3),
                                        dtype=jnp.float32)
    w_imag = scale * jax.random.uniform(kwi, (4, Cin, Cout, m1, m2, m3),
                                        dtype=jnp.float32)
    # 1x1 Conv1d weight/bias.
    conv_w = 0.1 * jax.random.normal(kcw, (Cout, Cin), dtype=jnp.float32)
    conv_b = 0.1 * jax.random.normal(kcb, (Cout,), dtype=jnp.float32)

    fb = jax.jit(fourier_block, static_argnums=(5, 6, 7))
    out = jax.block_until_ready(fb(x, w_real, w_imag, conv_w, conv_b,
                                   m1, m2, m3))

    ref = jax.block_until_ready(
        _reference(x, w_real, w_imag, conv_w, conv_b, m1, m2, m3))

    assert out.shape == (B, Cout, Nx, Ny, Nz)
    max_err = float(jnp.max(jnp.abs(out - ref)))
    assert jnp.allclose(out, ref, atol=2e-3, rtol=2e-3), \
        f"mismatch vs reference, max abs err {max_err:.3e}"
    print("KERNEL_OK")
</pallas_src>

<mosaic_0001>
module attributes {stable_mosaic.version = 11 : i64} {
  func.func @_spectral_mul_kernel(%arg0: i32, %arg1: memref<2x4x256xf32, #tpu.memory_space<vmem>>, %arg2: memref<2x4x256xf32, #tpu.memory_space<vmem>>, %arg3: memref<4x8x256xf32, #tpu.memory_space<vmem>>, %arg4: memref<4x8x256xf32, #tpu.memory_space<vmem>>, %arg5: memref<2x8x256xf32, #tpu.memory_space<vmem>>, %arg6: memref<2x8x256xf32, #tpu.memory_space<vmem>>) attributes {dimension_semantics = [#tpu.dimension_semantics<parallel>], iteration_bounds = array<i64: 1>, scalar_prefetch = 0 : i64, scratch_operands = 0 : i64, tpu.core_type = #tpu.core_type<tc>, window_params = [{transform_indices = @transform_0, window_bounds = array<i64: 2, 4, 256>}, {transform_indices = @transform_1, window_bounds = array<i64: 2, 4, 256>}, {transform_indices = @transform_2, window_bounds = array<i64: 4, 8, 256>}, {transform_indices = @transform_3, window_bounds = array<i64: 4, 8, 256>}, {transform_indices = @transform_4, window_bounds = array<i64: 2, 8, 256>}, {transform_indices = @transform_5, window_bounds = array<i64: 2, 8, 256>}]} {
    %c0 = arith.constant 0 : index
    %c0_0 = arith.constant 0 : index
    %c0_1 = arith.constant 0 : index
    %0 = vector.load %arg1[%c0, %c0_0, %c0_1] : memref<2x4x256xf32, #tpu.memory_space<vmem>>, vector<2x1x256xf32>
    %c0_2 = arith.constant 0 : index
    %c0_3 = arith.constant 0 : index
    %c0_4 = arith.constant 0 : index
    %1 = vector.load %arg2[%c0_2, %c0_3, %c0_4] : memref<2x4x256xf32, #tpu.memory_space<vmem>>, vector<2x1x256xf32>
    %c0_5 = arith.constant 0 : index
    %c0_6 = arith.constant 0 : index
    %c0_7 = arith.constant 0 : index
    %2 = vector.load %arg3[%c0_5, %c0_6, %c0_7] : memref<4x8x256xf32, #tpu.memory_space<vmem>>, vector<1x8x256xf32>
    %c0_8 = arith.constant 0 : index
    %c0_9 = arith.constant 0 : index
    %c0_10 = arith.constant 0 : index
    %3 = vector.load %arg4[%c0_8, %c0_9, %c0_10] : memref<4x8x256xf32, #tpu.memory_space<vmem>>, vector<1x8x256xf32>
    %4 = vector.broadcast %0 : vector<2x1x256xf32> to vector<2x8x256xf32>
    %5 = vector.broadcast %2 : vector<1x8x256xf32> to vector<2x8x256xf32>
    %6 = arith.mulf %4, %5 : vector<2x8x256xf32>
    %7 = vector.broadcast %1 : vector<2x1x256xf32> to vector<2x8x256xf32>
    %8 = vector.broadcast %3 : vector<1x8x256xf32> to vector<2x8x256xf32>
    %9 = arith.mulf %7, %8 : vector<2x8x256xf32>
    %10 = arith.subf %6, %9 : vector<2x8x256xf32>
    %11 = vector.broadcast %0 : vector<2x1x256xf32> to vector<2x8x256xf32>
    %12 = vector.broadcast %3 : vector<1x8x256xf32> to vector<2x8x256xf32>
    %13 = arith.mulf %11, %12 : vector<2x8x256xf32>
    %14 = vector.broadcast %1 : vector<2x1x256xf32> to vector<2x8x256xf32>
    %15 = vector.broadcast %2 : vector<1x8x256xf32> to vector<2x8x256xf32>
    %16 = arith.mulf %14, %15 : vector<2x8x256xf32>
    %17 = arith.addf %13, %16 : vector<2x8x256xf32>
    %c0_11 = arith.constant 0 : index
    %c1 = arith.constant 1 : index
    %c0_12 = arith.constant 0 : index
    %18 = vector.load %arg1[%c0_11, %c1, %c0_12] : memref<2x4x256xf32, #tpu.memory_space<vmem>>, vector<2x1x256xf32>
    %c0_13 = arith.constant 0 : index
    %c1_14 = arith.constant 1 : index
    %c0_15 = arith.constant 0 : index
    %19 = vector.load %arg2[%c0_13, %c1_14, %c0_15] : memref<2x4x256xf32, #tpu.memory_space<vmem>>, vector<2x1x256xf32>
    %c1_16 = arith.constant 1 : index
    %c0_17 = arith.constant 0 : index
    %c0_18 = arith.constant 0 : index
    %20 = vector.load %arg3[%c1_16, %c0_17, %c0_18] : memref<4x8x256xf32, #tpu.memory_space<vmem>>, vector<1x8x256xf32>
    %c1_19 = arith.constant 1 : index
    %c0_20 = arith.constant 0 : index
    %c0_21 = arith.constant 0 : index
    %21 = vector.load %arg4[%c1_19, %c0_20, %c0_21] : memref<4x8x256xf32, #tpu.memory_space<vmem>>, vector<1x8x256xf32>
    %22 = vector.broadcast %18 : vector<2x1x256xf32> to vector<2x8x256xf32>
    %23 = vector.broadcast %20 : vector<1x8x256xf32> to vector<2x8x256xf32>
    %24 = arith.mulf %22, %23 : vector<2x8x256xf32>
    %25 = arith.addf %10, %24 : vector<2x8x256xf32>
    %26 = vector.broadcast %19 : vector<2x1x256xf32> to vector<2x8x256xf32>
    %27 = vector.broadcast %21 : vector<1x8x256xf32> to vector<2x8x256xf32>
    %28 = arith.mulf %26, %27 : vector<2x8x256xf32>
    %29 = arith.subf %25, %28 : vector<2x8x256xf32>
    %30 = vector.broadcast %18 : vector<2x1x256xf32> to vector<2x8x256xf32>
    %31 = vector.broadcast %21 : vector<1x8x256xf32> to vector<2x8x256xf32>
    %32 = arith.mulf %30, %31 : vector<2x8x256xf32>
    %33 = arith.addf %17, %32 : vector<2x8x256xf32>
    %34 = vector.broadcast %19 : vector<2x1x256xf32> to vector<2x8x256xf32>
    %35 = vector.broadcast %20 : vector<1x8x256xf32> to vector<2x8x256xf32>
    %36 = arith.mulf %34, %35 : vector<2x8x256xf32>
    %37 = arith.addf %33, %36 : vector<2x8x256xf32>
    %c0_22 = arith.constant 0 : index
    %c2 = arith.constant 2 : index
    %c0_23 = arith.constant 0 : index
    %38 = vector.load %arg1[%c0_22, %c2, %c0_23] : memref<2x4x256xf32, #tpu.memory_space<vmem>>, vector<2x1x256xf32>
    %c0_24 = arith.constant 0 : index
    %c2_25 = arith.constant 2 : index
    %c0_26 = arith.constant 0 : index
    %39 = vector.load %arg2[%c0_24, %c2_25, %c0_26] : memref<2x4x256xf32, #tpu.memory_space<vmem>>, vector<2x1x256xf32>
    %c2_27 = arith.constant 2 : index
    %c0_28 = arith.constant 0 : index
    %c0_29 = arith.constant 0 : index
    %40 = vector.load %arg3[%c2_27, %c0_28, %c0_29] : memref<4x8x256xf32, #tpu.memory_space<vmem>>, vector<1x8x256xf32>
    %c2_30 = arith.constant 2 : index
    %c0_31 = arith.constant 0 : index
    %c0_32 = arith.constant 0 : index
    %41 = vector.load %arg4[%c2_30, %c0_31, %c0_32] : memref<4x8x256xf32, #tpu.memory_space<vmem>>, vector<1x8x256xf32>
    %42 = vector.broadcast %38 : vector<2x1x256xf32> to vector<2x8x256xf32>
    %43 = vector.broadcast %40 : vector<1x8x256xf32> to vector<2x8x256xf32>
    %44 = arith.mulf %42, %43 : vector<2x8x256xf32>
    %45 = arith.addf %29, %44 : vector<2x8x256xf32>
    %46 = vector.broadcast %39 : vector<2x1x256xf32> to vector<2x8x256xf32>
    %47 = vector.broadcast %41 : vector<1x8x256xf32> to vector<2x8x256xf32>
    %48 = arith.mulf %46, %47 : vector<2x8x256xf32>
    %49 = arith.subf %45, %48 : vector<2x8x256xf32>
    %50 = vector.broadcast %38 : vector<2x1x256xf32> to vector<2x8x256xf32>
    %51 = vector.broadcast %41 : vector<1x8x256xf32> to vector<2x8x256xf32>
    %52 = arith.mulf %50, %51 : vector<2x8x256xf32>
    %53 = arith.addf %37, %52 : vector<2x8x256xf32>
    %54 = vector.broadcast %39 : vector<2x1x256xf32> to vector<2x8x256xf32>
    %55 = vector.broadcast %40 : vector<1x8x256xf32> to vector<2x8x256xf32>
    %56 = arith.mulf %54, %55 : vector<2x8x256xf32>
    %57 = arith.addf %53, %56 : vector<2x8x256xf32>
    %c0_33 = arith.constant 0 : index
    %c3 = arith.constant 3 : index
    %c0_34 = arith.constant 0 : index
    %58 = vector.load %arg1[%c0_33, %c3, %c0_34] : memref<2x4x256xf32, #tpu.memory_space<vmem>>, vector<2x1x256xf32>
    %c0_35 = arith.constant 0 : index
    %c3_36 = arith.constant 3 : index
    %c0_37 = arith.constant 0 : index
    %59 = vector.load %arg2[%c0_35, %c3_36, %c0_37] : memref<2x4x256xf32, #tpu.memory_space<vmem>>, vector<2x1x256xf32>
    %c3_38 = arith.constant 3 : index
    %c0_39 = arith.constant 0 : index
    %c0_40 = arith.constant 0 : index
    %60 = vector.load %arg3[%c3_38, %c0_39, %c0_40] : memref<4x8x256xf32, #tpu.memory_space<vmem>>, vector<1x8x256xf32>
    %c3_41 = arith.constant 3 : index
    %c0_42 = arith.constant 0 : index
    %c0_43 = arith.constant 0 : index
    %61 = vector.load %arg4[%c3_41, %c0_42, %c0_43] : memref<4x8x256xf32, #tpu.memory_space<vmem>>, vector<1x8x256xf32>
    %62 = vector.broadcast %58 : vector<2x1x256xf32> to vector<2x8x256xf32>
    %63 = vector.broadcast %60 : vector<1x8x256xf32> to vector<2x8x256xf32>
    %64 = arith.mulf %62, %63 : vector<2x8x256xf32>
    %65 = arith.addf %49, %64 : vector<2x8x256xf32>
    %66 = vector.broadcast %59 : vector<2x1x256xf32> to vector<2x8x256xf32>
    %67 = vector.broadcast %61 : vector<1x8x256xf32> to vector<2x8x256xf32>
    %68 = arith.mulf %66, %67 : vector<2x8x256xf32>
    %69 = arith.subf %65, %68 : vector<2x8x256xf32>
    %70 = vector.broadcast %58 : vector<2x1x256xf32> to vector<2x8x256xf32>
    %71 = vector.broadcast %61 : vector<1x8x256xf32> to vector<2x8x256xf32>
    %72 = arith.mulf %70, %71 : vector<2x8x256xf32>
    %73 = arith.addf %57, %72 : vector<2x8x256xf32>
    %74 = vector.broadcast %59 : vector<2x1x256xf32> to vector<2x8x256xf32>
    %75 = vector.broadcast %60 : vector<1x8x256xf32> to vector<2x8x256xf32>
    %76 = arith.mulf %74, %75 : vector<2x8x256xf32>
    %77 = arith.addf %73, %76 : vector<2x8x256xf32>
    %c0_44 = arith.constant 0 : index
    %c0_45 = arith.constant 0 : index
    %c0_46 = arith.constant 0 : index
    %78 = vector.load %arg5[%c0_44, %c0_45, %c0_46] : memref<2x8x256xf32, #tpu.memory_space<vmem>>, vector<2x8x256xf32>
    tpu.vector_store %arg5[%c0_44, %c0_45, %c0_46], %69 {strides = array<i32>} : memref<2x8x256xf32, #tpu.memory_space<vmem>>, vector<2x8x256xf32>,
    %c0_47 = arith.constant 0 : index
    %c0_48 = arith.constant 0 : index
    %c0_49 = arith.constant 0 : index
    %79 = vector.load %arg6[%c0_47, %c0_48, %c0_49] : memref<2x8x256xf32, #tpu.memory_space<vmem>>, vector<2x8x256xf32>
    tpu.vector_store %arg6[%c0_47, %c0_48, %c0_49], %77 {strides = array<i32>} : memref<2x8x256xf32, #tpu.memory_space<vmem>>, vector<2x8x256xf32>,
    return
  }
  func.func @transform_0(%arg0: i32) -> (i32, i32, i32) {
    %c0_i32 = arith.constant 0 : i32
    %c0_i32_0 = arith.constant 0 : i32
    %c0_i32_1 = arith.constant 0 : i32
    return %c0_i32, %c0_i32_0, %arg0 : i32, i32, i32
  }
  func.func @transform_1(%arg0: i32) -> (i32, i32, i32) {
    %c0_i32 = arith.constant 0 : i32
    %c0_i32_0 = arith.constant 0 : i32
    %c0_i32_1 = arith.constant 0 : i32
    return %c0_i32, %c0_i32_0, %arg0 : i32, i32, i32
  }
  func.func @transform_2(%arg0: i32) -> (i32, i32, i32) {
    %c0_i32 = arith.constant 0 : i32
    %c0_i32_0 = arith.constant 0 : i32
    %c0_i32_1 = arith.constant 0 : i32
    return %c0_i32, %c0_i32_0, %arg0 : i32, i32, i32
  }
  func.func @transform_3(%arg0: i32) -> (i32, i32, i32) {
    %c0_i32 = arith.constant 0 : i32
    %c0_i32_0 = arith.constant 0 : i32
    %c0_i32_1 = arith.constant 0 : i32
    return %c0_i32, %c0_i32_0, %arg0 : i32, i32, i32
  }
  func.func @transform_4(%arg0: i32) -> (i32, i32, i32) {
    %c0_i32 = arith.constant 0 : i32
    %c0_i32_0 = arith.constant 0 : i32
    %c0_i32_1 = arith.constant 0 : i32
    return %c0_i32, %c0_i32_0, %arg0 : i32, i32, i32
  }
  func.func @transform_5(%arg0: i32) -> (i32, i32, i32) {
    %c0_i32 = arith.constant 0 : i32
    %c0_i32_0 = arith.constant 0 : i32
    %c0_i32_1 = arith.constant 0 : i32
    return %c0_i32, %c0_i32_0, %arg0 : i32, i32, i32
  }
}

module attributes {stable_mosaic.version = 11 : i64} {
  func.func @_linear_add_tanh_kernel(%arg0: i32, %arg1: i32, %arg2: memref<8x4xf32, #tpu.memory_space<vmem>>, %arg3: memref<8x1xf32, #tpu.memory_space<vmem>>, %arg4: memref<1x4x512xf32, #tpu.memory_space<vmem>>, %arg5: memref<1x8x512xf32, #tpu.memory_space<vmem>>, %arg6: memref<1x8x512xf32, #tpu.memory_space<vmem>>) attributes {dimension_semantics = [#tpu.dimension_semantics<parallel>, #tpu.dimension_semantics<parallel>], iteration_bounds = array<i64: 2, 8>, scalar_prefetch = 0 : i64, scratch_operands = 0 : i64, tpu.core_type = #tpu.core_type<tc>, window_params = [{pipeline_mode = #tpu.pipeline_mode<synchronous>, transform_indices = @transform_0, window_bounds = array<i64: 8, 4>}, {pipeline_mode = #tpu.pipeline_mode<synchronous>, transform_indices = @transform_1, window_bounds = array<i64: 8, 1>}, {transform_indices = @transform_2, window_bounds = array<i64: 1, 4, 512>}, {transform_indices = @transform_3, window_bounds = array<i64: 1, 8, 512>}, {transform_indices = @transform_4, window_bounds = array<i64: 1, 8, 512>}]} {
    %c0 = arith.constant 0 : index
    %c0_0 = arith.constant 0 : index
    %c0_1 = arith.constant 0 : index
    %0 = vector.load %arg4[%c0, %c0_0, %c0_1] : memref<1x4x512xf32, #tpu.memory_space<vmem>>, vector<1x4x512xf32>
    %1 = vector.shape_cast %0 : vector<1x4x512xf32> to vector<4x512xf32>
    %c0_2 = arith.constant 0 : index
    %c0_3 = arith.constant 0 : index
    %c0_4 = arith.constant 0 : index
    %2 = vector.load %arg5[%c0_2, %c0_3, %c0_4] : memref<1x8x512xf32, #tpu.memory_space<vmem>>, vector<1x8x512xf32>
    %3 = vector.shape_cast %2 : vector<1x8x512xf32> to vector<8x512xf32>
    %c0_5 = arith.constant 0 : index
    %c0_6 = arith.constant 0 : index
    %4 = vector.load %arg3[%c0_5, %c0_6] : memref<8x1xf32, #tpu.memory_space<vmem>>, vector<8x1xf32>
    %5 = vector.broadcast %4 : vector<8x1xf32> to vector<8x512xf32>
    %6 = arith.addf %3, %5 : vector<8x512xf32>
    %c0_7 = arith.constant 0 : index
    %c0_8 = arith.constant 0 : index
    %7 = vector.load %arg2[%c0_7, %c0_8] : memref<8x4xf32, #tpu.memory_space<vmem>>, vector<8x1xf32>
    %8 = vector.extract_strided_slice %1 {offsets = [0, 0], sizes = [1, 512], strides = [1, 1]} : vector<4x512xf32> to vector<1x512xf32>
    %9 = vector.broadcast %7 : vector<8x1xf32> to vector<8x512xf32>
    %10 = vector.broadcast %8 : vector<1x512xf32> to vector<8x512xf32>
    %11 = arith.mulf %9, %10 : vector<8x512xf32>
    %12 = arith.addf %6, %11 : vector<8x512xf32>
    %c0_9 = arith.constant 0 : index
    %c1 = arith.constant 1 : index
    %13 = vector.load %arg2[%c0_9, %c1] : memref<8x4xf32, #tpu.memory_space<vmem>>, vector<8x1xf32>
    %14 = vector.extract_strided_slice %1 {offsets = [1, 0], sizes = [1, 512], strides = [1, 1]} : vector<4x512xf32> to vector<1x512xf32>
    %15 = vector.broadcast %13 : vector<8x1xf32> to vector<8x512xf32>
    %16 = vector.broadcast %14 : vector<1x512xf32> to vector<8x512xf32>
    %17 = arith.mulf %15, %16 : vector<8x512xf32>
    %18 = arith.addf %12, %17 : vector<8x512xf32>
    %c0_10 = arith.constant 0 : index
    %c2 = arith.constant 2 : index
    %19 = vector.load %arg2[%c0_10, %c2] : memref<8x4xf32, #tpu.memory_space<vmem>>, vector<8x1xf32>
    %20 = vector.extract_strided_slice %1 {offsets = [2, 0], sizes = [1, 512], strides = [1, 1]} : vector<4x512xf32> to vector<1x512xf32>
    %21 = vector.broadcast %19 : vector<8x1xf32> to vector<8x512xf32>
    %22 = vector.broadcast %20 : vector<1x512xf32> to vector<8x512xf32>
    %23 = arith.mulf %21, %22 : vector<8x512xf32>
    %24 = arith.addf %18, %23 : vector<8x512xf32>
    %c0_11 = arith.constant 0 : index
    %c3 = arith.constant 3 : index
    %25 = vector.load %arg2[%c0_11, %c3] : memref<8x4xf32, #tpu.memory_space<vmem>>, vector<8x1xf32>
    %26 = vector.extract_strided_slice %1 {offsets = [3, 0], sizes = [1, 512], strides = [1, 1]} : vector<4x512xf32> to vector<1x512xf32>
    %27 = vector.broadcast %25 : vector<8x1xf32> to vector<8x512xf32>
    %28 = vector.broadcast %26 : vector<1x512xf32> to vector<8x512xf32>
    %29 = arith.mulf %27, %28 : vector<8x512xf32>
    %30 = arith.addf %24, %29 : vector<8x512xf32>
    %31 = math.tanh %30 : vector<8x512xf32>
    %c0_12 = arith.constant 0 : index
    %c0_13 = arith.constant 0 : index
    %c0_14 = arith.constant 0 : index
    %32 = vector.load %arg6[%c0_12, %c0_13, %c0_14] : memref<1x8x512xf32, #tpu.memory_space<vmem>>, vector<1x8x512xf32>
    %33 = vector.shape_cast %32 : vector<1x8x512xf32> to vector<8x512xf32>
    %34 = vector.shape_cast %31 : vector<8x512xf32> to vector<1x8x512xf32>
    tpu.vector_store %arg6[%c0_12, %c0_13, %c0_14], %34 {strides = array<i32>} : memref<1x8x512xf32, #tpu.memory_space<vmem>>, vector<1x8x512xf32>,
    return
  }
  func.func @transform_0(%arg0: i32, %arg1: i32) -> (i32, i32) {
    %c0_i32 = arith.constant 0 : i32
    %c0_i32_0 = arith.constant 0 : i32
    %c0_i32_1 = arith.constant 0 : i32
    return %c0_i32, %c0_i32_0 : i32, i32
  }
  func.func @transform_1(%arg0: i32, %arg1: i32) -> (i32, i32) {
    %c0_i32 = arith.constant 0 : i32
    %c0_i32_0 = arith.constant 0 : i32
    %c0_i32_1 = arith.constant 0 : i32
    return %c0_i32, %c0_i32_0 : i32, i32
  }
  func.func @transform_2(%arg0: i32, %arg1: i32) -> (i32, i32, i32) {
    %c0_i32 = arith.constant 0 : i32
    %c0_i32_0 = arith.constant 0 : i32
    return %arg0, %c0_i32, %arg1 : i32, i32, i32
  }
  func.func @transform_3(%arg0: i32, %arg1: i32) -> (i32, i32, i32) {
    %c0_i32 = arith.constant 0 : i32
    %c0_i32_0 = arith.constant 0 : i32
    return %arg0, %c0_i32, %arg1 : i32, i32, i32
  }
  func.func @transform_4(%arg0: i32, %arg1: i32) -> (i32, i32, i32) {
    %c0_i32 = arith.constant 0 : i32
    %c0_i32_0 = arith.constant 0 : i32
    return %arg0, %c0_i32, %arg1 : i32, i32, i32
  }
}

</mosaic_0001>

<bundles_post_ra>
// kernel: fourier_block.2
= control target key start
LH: loop header
LB: loop body
LE: loop exit
PB: predicated region body
PF: predicated region fallthrough
CT: control target
= control target key end

     0   :  { %v31_v0 = vlaneseq  ;;  %s821_s0 = inlined_call_operand.vmem [shape: f32[2,4,256], index: 0, kind: input, shape index: {}]   ;;  %s822_s1 = inlined_call_operand.vmem [shape: f32[2,4,256], index: 1, kind: input, shape index: {}]   ;;  %s823_s2 = inlined_call_operand.vmem [shape: f32[4,8,256], index: 2, kind: input, shape index: {}]   ;;  %s824_s3 = inlined_call_operand.vmem [shape: f32[4,8,256], index: 3, kind: input, shape index: {}]   ;;  %s825_s4 = inlined_call_operand.vmem [shape: f32[2,8,256], index: 4, kind: output, shape index: {0}]   ;;  %s826_s5 = inlined_call_operand.vmem [shape: f32[2,8,256], index: 5, kind: output, shape index: {1}]  }
   0x1   :  { %v19_v1 = vld [vmem:[%s821_s0] ss:$4 sm:$0x3]  ;;  %v385_v5 = vld [vmem:[%s821_s0 + $0x1] ss:$4 sm:$0x3] }
   0x2   :  { %v22_v2 = vld [vmem:[%s822_s1] ss:$4 sm:$0x3]  ;;  %v32_v3 = vshrl.u32 %v31_v0, 7  ;;  %v466_v9 = vld [vmem:[%s823_s2 + $0x10] sm:$0xff]  ;;  %v554_v39 = vld [vmem:[%s823_s2 + $0x8] sm:$0xff] }
   0x3   :  { %v448_v4 = vld [vmem:[%s823_s2] sm:$0xff]  ;;  %v502_v21 = vld [vmem:[%s823_s2 + $0x30] sm:$0xff]  ;;  %v531_v31 = vld [vmem:[%s821_s0 + $0x8] ss:$4 sm:$0x3] }
   0x4   :  { %v387_v6 = vld [vmem:[%s822_s1 + $0x1] ss:$4 sm:$0x3]  ;;  %v461_v8 = vsub.s32 0, %v32_v3  ;;  %v515_v26 = vld [vmem:[%s824_s3 + $0x10] sm:$0xff]  ;;  %v542_v36 = vsub.s32 1, %v32_v3 }
   0x5   :  { %v459_v7 = vld [vmem:[%s824_s3] sm:$0xff]  ;;  %v538_v34 = vld [vmem:[%s824_s3 + $0x30] sm:$0xff]  ;;  %v384_v37 = vld [vmem:[%s822_s1 + $0x8] ss:$4 sm:$0x3] }
   0x6   :  { %v393_v10 = vld [vmem:[%s821_s0 + $0x2] ss:$4 sm:$0x3]  ;;  %v401_v12 = vld [vmem:[%s821_s0 + $0x3] ss:$4 sm:$0x3]  ;;  %v34_v13 = vrot.slane %v19_v1, %v461_v8  ;;  %v60_v14 = vrot.slane %v22_v2, %v461_v8  ;;  %v480_v15 = vrot.slane %v385_v5, %v461_v8  ;;  %v483_v16 = vrot.slane %v387_v6, %v461_v8 }
   0x7   :  { %v395_v11 = vld [vmem:[%s822_s1 + $0x2] ss:$4 sm:$0x3]  ;;  %v403_v18 = vld [vmem:[%s822_s1 + $0x3] ss:$4 sm:$0x3]  ;;  %v494_v19 = vrot.slane %v393_v10, %v461_v8  ;;  %v505_v22 = vrot.slane %v401_v12, %v461_v8  ;;  %v568_v42 = vrot.slane %v531_v31, %v461_v8  ;;  %v571_v43 = vrot.slane %v384_v37, %v461_v8 }
   0x8   :  { %v488_v17 = vld [vmem:[%s823_s2 + $0x20] sm:$0xff]  ;;  %v497_v20 = vrot.slane %v395_v11, %v461_v8  ;;  %v508_v23 = vrot.slane %v403_v18, %v461_v8  ;;  %v51_v24 = vmul.f32 %v34_v13, %v448_v4  ;;  %v77_v25 = vmul.f32 %v60_v14, %v459_v7  ;;  %v559_v40 = vld [vmem:[%s824_s3 + $0x8] sm:$0xff]  ;;  %v564_v41 = vld [vmem:[%s823_s2 + $0x18] sm:$0xff] }
   0x9   :  { %v133_v27 = vmul.f32 %v466_v9, %v480_v15  ;;  %v163_v28 = vmul.f32 %v515_v26, %v483_v16  ;;  %v524_v29 = vld [vmem:[%s824_s3 + $0x20] sm:$0xff]  ;;  %v223_v30 = vmul.f32 %v488_v17, %v494_v19  ;;  %v313_v35 = vmul.f32 %v502_v21, %v505_v22  ;;  %v588_v49 = vld [vmem:[%s823_s2 + $0x28] sm:$0xff]  ;;  %v593_v50 = vld [vmem:[%s824_s3 + $0x18] sm:$0xff] }
   0xa   :  { %v81_v32 = vsub.f32 %v51_v24, %v77_v25  ;;  %v253_v33 = vmul.f32 %v524_v29, %v497_v20  ;;  %v549_v38 = vmul.f32 %v538_v34, %v508_v23  ;;  %v574_v44 = vmul.f32 %v34_v13, %v459_v7  ;;  %v601_v52 = vld [vmem:[%s824_s3 + $0x28] sm:$0xff] }
   0xb   :  { %v577_v46 = vrot.slane %v19_v1, %v542_v36  ;;  %v580_v47 = vrot.slane %v22_v2, %v542_v36  ;;  %v583_v48 = vrot.slane %v385_v5, %v542_v36  ;;  %v596_v51 = vrot.slane %v387_v6, %v542_v36  ;;  %v386_v56 = vld [vmem:[%s821_s0 + $0x9] ss:$4 sm:$0x3]  ;;  %v394_v62 = vld [vmem:[%s821_s0 + $0xa] ss:$4 sm:$0x3] }
   0xc   :  { %v137_v45 = vadd.f32 %v133_v27, %v81_v32  ;;  %v604_v53 = vrot.slane %v393_v10, %v542_v36  ;;  %v607_v54 = vrot.slane %v395_v11, %v542_v36  ;;  %v610_v55 = vrot.slane %v401_v12, %v542_v36  ;;  %v388_v61 = vld [vmem:[%s822_s1 + $0x9] ss:$4 sm:$0x3]  ;;  %v636_v2 = vld [vmem:[%s823_s2 + $0x38] sm:$0xff] }
   0xd   :  { %v52_v58 = vmul.f32 %v577_v46, %v554_v39  ;;  %v78_v59 = vmul.f32 %v580_v47, %v559_v40  ;;  %v134_v60 = vmul.f32 %v564_v41, %v583_v48  ;;  %v164_v63 = vmul.f32 %v593_v50, %v596_v51  ;;  %v396_v3 = vld [vmem:[%s822_s1 + $0xa] ss:$4 sm:$0x3] }
   0xe   :  { %832 = vst [vmem:[#allocation2_spill] sm:$0xff] %v607_v54  ;;  %833 = vst [vmem:[#allocation3_spill] sm:$0xff] %v610_v55  ;;  %v167_v57 = vsub.f32 %v137_v45, %v163_v28  ;;  %v224_v0 = vmul.f32 %v588_v49, %v604_v53  ;;  %v254_v1 = vmul.f32 %v601_v52, %v607_v54 }
   0xf   :  { %v89_v5 = vmul.f32 %v60_v14, %v448_v4  ;;  %v82_v10 = vsub.f32 %v52_v58, %v78_v59  ;;  %v643_v11 = vrot.slane %v403_v18, %v542_v36  ;;  %v53_v12 = vmul.f32 %v568_v42, %v448_v4  ;;  %v402_v14 = vld [vmem:[%s821_s0 + $0xb] ss:$4 sm:$0x3] }
  0x10   :  { %v227_v6 = vadd.f32 %v223_v30, %v167_v57  ;;  %v79_v13 = vmul.f32 %v571_v43, %v459_v7  ;;  %v650_v24 = vrot.slane %v386_v56, %v461_v8  ;;  %v653_v25 = vrot.slane %v388_v61, %v461_v8  ;;  %v664_v30 = vld [vmem:[%s824_s3 + $0x38] sm:$0xff] }
  0x11   :  { %834 = vst [vmem:[#allocation4_spill] sm:$0xff] %v643_v11  ;;  %v656_v27 = vrot.slane %v394_v62, %v461_v8  ;;  %v138_v28 = vadd.f32 %v134_v60, %v82_v10  ;;  %v314_v32 = vmul.f32 %v636_v2, %v610_v55  ;;  %v669_v45 = vrot.slane %v396_v3, %v461_v8  ;;  %v404_v60 = vld [vmem:[%s822_s1 + $0xb] ss:$4 sm:$0x3] }
  0x12   :  { %835 = vst [vmem:[#allocation5_spill] sm:$0xff] %v653_v25  ;;  %v257_v18 = vsub.f32 %v227_v6, %v253_v33  ;;  %v344_v57 = vmul.f32 %v664_v30, %v643_v11  ;;  %v83_v58 = vsub.f32 %v53_v12, %v79_v13  ;;  %v135_v59 = vmul.f32 %v466_v9, %v650_v24 }
  0x13   :  { %v165_v33 = vmul.f32 %v515_v26, %v653_v25  ;;  %v168_v10 = vsub.f32 %v138_v28, %v164_v63  ;;  %v225_v55 = vmul.f32 %v488_v17, %v656_v27  ;;  %v683_v54 = vrot.slane %v402_v14, %v461_v8 }
  0x14   :  { %v317_v6 = vadd.f32 %v313_v35, %v257_v18  ;;  %v139_v11 = vadd.f32 %v135_v59, %v83_v58  ;;  %v255_v12 = vmul.f32 %v524_v29, %v669_v45  ;;  %v689_v13 = vrot.slane %v531_v31, %v542_v36 }
  0x15   :  { %836 = vst [vmem:[#allocation6_spill] sm:$0xff] %v683_v54  ;;  %v692_v25 = vrot.slane %v384_v37, %v542_v36  ;;  %v228_v63 = vadd.f32 %v224_v0, %v168_v10  ;;  %v696_v18 = vrot.slane %v404_v60, %v461_v8  ;;  %v699_v28 = vrot.slane %v386_v56, %v542_v36 }
  0x16   :  { %v347_v35 = vsub.f32 %v317_v6, %v549_v38  ;;  %v169_v58 = vsub.f32 %v139_v11, %v165_v33  ;;  %v315_v59 = vmul.f32 %v502_v21, %v683_v54  ;;  %v54_v31 = vmul.f32 %v689_v13, %v554_v39 }
  0x17   :  { %v80_v37 = vmul.f32 %v692_v25, %v559_v40  ;;  %v258_v38 = vsub.f32 %v228_v63, %v254_v1  ;;  %v136_v8 = vmul.f32 %v564_v41, %v699_v28  ;;  %v713_v56 = vrot.slane %v388_v61, %v542_v36 }
  0x18   :  { %367 = vst [vmem:[%s825_s4] sm:$0xff] %v347_v35  ;;  %v716_v0 = vrot.slane %v394_v62, %v542_v36  ;;  %v229_v11 = vadd.f32 %v225_v55, %v169_v58  ;;  %v719_v6 = vrot.slane %v396_v3, %v542_v36  ;;  %v722_v10 = vrot.slane %v402_v14, %v542_v36 }
  0x19   :  { %v84_v33 = vsub.f32 %v54_v31, %v80_v37  ;;  %v318_v54 = vadd.f32 %v314_v32, %v258_v38  ;;  %v345_v1 = vmul.f32 %v538_v34, %v696_v18  ;;  %v166_v35 = vmul.f32 %v593_v50, %v713_v56 }
  0x1a   :  { %v171_v61 = vmul.f32 %v515_v26, %v480_v15  ;;  %v259_v62 = vsub.f32 %v229_v11, %v255_v12  ;;  %v226_v55 = vmul.f32 %v588_v49, %v716_v0  ;;  %v733_v3 = vrot.slane %v404_v60, %v542_v36 }
  0x1b   :  { %v140_v63 = vadd.f32 %v136_v8, %v84_v33  ;;  %v348_v14 = vsub.f32 %v318_v54, %v344_v57  ;;  %v93_v32 = vadd.f32 %v89_v5, %v574_v44  ;;  %v179_v58 = vmul.f32 %v466_v9, %v483_v16 }
  0x1c   :  { %v319_v31 = vadd.f32 %v315_v59, %v259_v62  ;;  %v256_v38 = vmul.f32 %v601_v52, %v719_v6  ;;  %v316_v15 = vmul.f32 %v636_v2, %v722_v10  ;;  %v261_v54 = vmul.f32 %v524_v29, %v494_v19 }
  0x1d   :  { %v170_v37 = vsub.f32 %v140_v63, %v166_v35  ;;  %368 = vst [vmem:[%s825_s4 + $0x8] sm:$0xff] %v348_v14  ;;  %v175_v36 = vadd.f32 %v171_v61, %v93_v32  ;;  %v86_v44 = vmul.f32 %v577_v46, %v559_v40  ;;  %v90_v16 = vmul.f32 %v580_v47, %v554_v39  ;;  %v837_v63 = vld [vmem:[#allocation2_spill] sm:$0xff]  ;;  %v839_v32 = vld [vmem:[#allocation5_spill] sm:$0xff] }
  0x1e   :  { %v349_v5 = vsub.f32 %v319_v31, %v345_v1  ;;  %v346_v60 = vmul.f32 %v664_v30, %v733_v3  ;;  %v172_v12 = vmul.f32 %v593_v50, %v583_v48  ;;  %v269_v8 = vmul.f32 %v488_v17, %v497_v20 }
  0x1f   :  { %v230_v57 = vadd.f32 %v226_v55, %v170_v37  ;;  %v183_v59 = vadd.f32 %v179_v58, %v175_v36  ;;  %v94_v11 = vadd.f32 %v90_v16, %v86_v44  ;;  %v180_v19 = vmul.f32 %v564_v41, %v596_v51  ;;  %v838_v55 = vld [vmem:[#allocation3_spill] sm:$0xff]  ;;  %v841_v44 = vld [vmem:[#allocation6_spill] sm:$0xff] }
  0x20   :  { %369 = vst [vmem:[%s825_s4 + $0x10] sm:$0xff] %v349_v5  ;;  %v351_v47 = vmul.f32 %v538_v34, %v505_v22  ;;  %v262_v33 = vmul.f32 %v601_v52, %v604_v53  ;;  %v87_v48 = vmul.f32 %v568_v42, %v459_v7  ;;  %v91_v35 = vmul.f32 %v571_v43, %v448_v4 }
  0x21   :  { %v260_v46 = vsub.f32 %v230_v57, %v256_v38  ;;  %v265_v1 = vadd.f32 %v261_v54, %v183_v59  ;;  %v176_v20 = vadd.f32 %v172_v12, %v94_v11  ;;  %v173_v51 = vmul.f32 %v515_v26, %v650_v24 }
  0x22   :  { %v359_v62 = vmul.f32 %v502_v21, %v508_v23  ;;  %v270_v22 = vmul.f32 %v588_v49, %v837_v63  ;;  %v352_v53 = vmul.f32 %v664_v30, %v838_v55  ;;  %v95_v42 = vadd.f32 %v91_v35, %v87_v48 }
  0x23   :  { %v320_v61 = vadd.f32 %v316_v15, %v260_v46  ;;  %v273_v14 = vadd.f32 %v269_v8, %v265_v1  ;;  %v184_v7 = vadd.f32 %v180_v19, %v176_v20  ;;  %v181_v58 = vmul.f32 %v466_v9, %v839_v32  ;;  %v840_v9 = vld [vmem:[#allocation4_spill] sm:$0xff] }
  0x24   :  { %v263_v26 = vmul.f32 %v524_v29, %v656_v27  ;;  %v88_v43 = vmul.f32 %v689_v13, %v559_v40  ;;  %v92_v23 = vmul.f32 %v692_v25, %v554_v39  ;;  %v177_v37 = vadd.f32 %v173_v51, %v95_v42 }
  0x25   :  { %v350_v4 = vsub.f32 %v320_v61, %v346_v60  ;;  %v355_v24 = vadd.f32 %v351_v47, %v273_v14  ;;  %v266_v31 = vadd.f32 %v262_v33, %v184_v7  ;;  %v174_v38 = vmul.f32 %v593_v50, %v699_v28 }
  0x26   :  { %v360_v15 = vmul.f32 %v636_v2, %v840_v9  ;;  %v96_v29 = vadd.f32 %v92_v23, %v88_v43  ;;  %v182_v40 = vmul.f32 %v564_v41, %v713_v56  ;;  %v185_v39 = vadd.f32 %v181_v58, %v177_v37 }
  0x27   :  { %370 = vst [vmem:[%s825_s4 + $0x18] sm:$0xff] %v350_v4  ;;  %v363_v27 = vadd.f32 %v359_v62, %v355_v24  ;;  %v274_v13 = vadd.f32 %v270_v22, %v266_v31  ;;  %v271_v25 = vmul.f32 %v488_v17, %v669_v45  ;;  %v264_v50 = vmul.f32 %v601_v52, %v716_v0 }
  0x28   :  { %v178_v36 = vadd.f32 %v174_v38, %v96_v29  ;;  %v267_v54 = vadd.f32 %v263_v26, %v185_v39  ;;  %v353_v16 = vmul.f32 %v538_v34, %v841_v44  ;;  %v272_v56 = vmul.f32 %v588_v49, %v719_v6 }
  0x29   :  { %371 = vst [vmem:[%s826_s5] sm:$0xff] %v363_v27  ;;  %v356_v28 = vadd.f32 %v352_v53, %v274_v13  ;;  %v361_v17 = vmul.f32 %v502_v21, %v696_v18  ;;  %v354_v52 = vmul.f32 %v664_v30, %v722_v10  ;;  %v362_v34 = vmul.f32 %v636_v2, %v733_v3 }
  0x2a   :  { %v186_v41 = vadd.f32 %v182_v40, %v178_v36  ;;  %v275_v57 = vadd.f32 %v271_v25, %v267_v54 }
  0x2b   :  { %v364_v5 = vadd.f32 %v360_v15, %v356_v28 }
  0x2c   :  { %v268_v45 = vadd.f32 %v264_v50, %v186_v41  ;;  %v357_v0 = vadd.f32 %v353_v16, %v275_v57 }
  0x2d   :  { %372 = vst [vmem:[%s826_s5 + $0x8] sm:$0xff] %v364_v5 }
  0x2e   :  { %v276_v60 = vadd.f32 %v272_v56, %v268_v45  ;;  %v365_v12 = vadd.f32 %v361_v17, %v357_v0 }
  0x30   :  { %v358_v49 = vadd.f32 %v354_v52, %v276_v60  ;;  %373 = vst [vmem:[%s826_s5 + $0x10] sm:$0xff] %v365_v12 }
  0x32   :  { %v366_v21 = vadd.f32 %v362_v34, %v358_v49 }
  0x34   :  { %374 = vst [vmem:[%s826_s5 + $0x18] sm:$0xff] %v366_v21 }

// kernel: reverse.1
= control target key start
LH: loop header
LB: loop body
LE: loop exit
PB: predicated region body
PF: predicated region fallthrough
CT: control target
= control target key end

     0   :  { %s2696_s0 = inlined_call_operand.vmem [shape: f32[2,8,16,16,7], index: 0, kind: input, shape index: {}]   ;;  %s2697_s1 = inlined_call_operand.vmem [shape: f32[2,8,16,16,7], index: 1, kind: output, shape index: {}]  }
   0x1   :  { %v896_v0 = vld [vmem:[%s2696_s0 + $0x60] sm:$0xff]  ;;  %v899_v2 = vld [vmem:[%s2696_s0 + $0xd0] sm:$0xff] }
   0x2   :  { %v897_v1 = vld [vmem:[%s2696_s0 + $0x3e0] sm:$0xff]  ;;  %4 = vst [vmem:[%s2697_s1] sm:$0xff] %v896_v0  ;;  %900 = vst [vmem:[%s2697_s1 + $0x70] sm:$0xff] %v899_v2  ;;  %v901_v3 = vld [vmem:[%s2696_s0 + $0x450] sm:$0xff] }
   0x3   :  { %898 = vst [vmem:[%s2697_s1 + $0x380] sm:$0xff] %v897_v1  ;;  %v903_v4 = vld [vmem:[%s2696_s0 + $0x140] sm:$0xff]  ;;  %902 = vst [vmem:[%s2697_s1 + $0x3f0] sm:$0xff] %v901_v3  ;;  %v907_v6 = vld [vmem:[%s2696_s0 + $0x1b0] sm:$0xff] }
   0x4   :  { %v905_v5 = vld [vmem:[%s2696_s0 + $0x4c0] sm:$0xff]  ;;  %904 = vst [vmem:[%s2697_s1 + $0xe0] sm:$0xff] %v903_v4  ;;  %v909_v7 = vld [vmem:[%s2696_s0 + $0x530] sm:$0xff]  ;;  %908 = vst [vmem:[%s2697_s1 + $0x150] sm:$0xff] %v907_v6 }
   0x5   :  { %906 = vst [vmem:[%s2697_s1 + $0x460] sm:$0xff] %v905_v5  ;;  %v911_v8 = vld [vmem:[%s2696_s0 + $0x220] sm:$0xff]  ;;  %910 = vst [vmem:[%s2697_s1 + $0x4d0] sm:$0xff] %v909_v7  ;;  %v915_v10 = vld [vmem:[%s2696_s0 + $0x290] sm:$0xff] }
   0x6   :  { %912 = vst [vmem:[%s2697_s1 + $0x1c0] sm:$0xff] %v911_v8  ;;  %v913_v9 = vld [vmem:[%s2696_s0 + $0x5a0] sm:$0xff]  ;;  %v917_v11 = vld [vmem:[%s2696_s0 + $0x610] sm:$0xff]  ;;  %916 = vst [vmem:[%s2697_s1 + $0x230] sm:$0xff] %v915_v10 }
   0x7   :  { %914 = vst [vmem:[%s2697_s1 + $0x540] sm:$0xff] %v913_v9  ;;  %918 = vst [vmem:[%s2697_s1 + $0x5b0] sm:$0xff] %v917_v11  ;;  %v919_v12 = vld [vmem:[%s2696_s0 + $0x300] sm:$0xff]  ;;  %v923_v14 = vld [vmem:[%s2696_s0 + $0x370] sm:$0xff] }
   0x8   :  { %v921_v13 = vld [vmem:[%s2696_s0 + $0x680] sm:$0xff]  ;;  %920 = vst [vmem:[%s2697_s1 + $0x2a0] sm:$0xff] %v919_v12  ;;  %924 = vst [vmem:[%s2697_s1 + $0x310] sm:$0xff] %v923_v14  ;;  %v925_v15 = vld [vmem:[%s2696_s0 + $0x6f0] sm:$0xff] }
   0x9   :  { %922 = vst [vmem:[%s2697_s1 + $0x620] sm:$0xff] %v921_v13  ;;  %v927_v16 = vld [vmem:[%s2696_s0 + $0x50] sm:$0xff]  ;;  %926 = vst [vmem:[%s2697_s1 + $0x690] sm:$0xff] %v925_v15  ;;  %v931_v18 = vld [vmem:[%s2696_s0 + $0xc0] sm:$0xff] }
   0xa   :  { %v929_v17 = vld [vmem:[%s2696_s0 + $0x3d0] sm:$0xff]  ;;  %928 = vst [vmem:[%s2697_s1 + $0x10] sm:$0xff] %v927_v16  ;;  %v933_v19 = vld [vmem:[%s2696_s0 + $0x440] sm:$0xff]  ;;  %932 = vst [vmem:[%s2697_s1 + $0x80] sm:$0xff] %v931_v18 }
   0xb   :  { %930 = vst [vmem:[%s2697_s1 + $0x390] sm:$0xff] %v929_v17  ;;  %v935_v20 = vld [vmem:[%s2696_s0 + $0x130] sm:$0xff]  ;;  %934 = vst [vmem:[%s2697_s1 + $0x400] sm:$0xff] %v933_v19  ;;  %v939_v22 = vld [vmem:[%s2696_s0 + $0x1a0] sm:$0xff] }
   0xc   :  { %936 = vst [vmem:[%s2697_s1 + $0xf0] sm:$0xff] %v935_v20  ;;  %v937_v21 = vld [vmem:[%s2696_s0 + $0x4b0] sm:$0xff]  ;;  %v941_v23 = vld [vmem:[%s2696_s0 + $0x520] sm:$0xff]  ;;  %940 = vst [vmem:[%s2697_s1 + $0x160] sm:$0xff] %v939_v22 }
   0xd   :  { %938 = vst [vmem:[%s2697_s1 + $0x470] sm:$0xff] %v937_v21  ;;  %942 = vst [vmem:[%s2697_s1 + $0x4e0] sm:$0xff] %v941_v23  ;;  %v943_v24 = vld [vmem:[%s2696_s0 + $0x210] sm:$0xff]  ;;  %v947_v26 = vld [vmem:[%s2696_s0 + $0x280] sm:$0xff] }
   0xe   :  { %v945_v25 = vld [vmem:[%s2696_s0 + $0x590] sm:$0xff]  ;;  %944 = vst [vmem:[%s2697_s1 + $0x1d0] sm:$0xff] %v943_v24  ;;  %948 = vst [vmem:[%s2697_s1 + $0x240] sm:$0xff] %v947_v26  ;;  %v949_v27 = vld [vmem:[%s2696_s0 + $0x600] sm:$0xff] }
   0xf   :  { %946 = vst [vmem:[%s2697_s1 + $0x550] sm:$0xff] %v945_v25  ;;  %v951_v28 = vld [vmem:[%s2696_s0 + $0x2f0] sm:$0xff]  ;;  %950 = vst [vmem:[%s2697_s1 + $0x5c0] sm:$0xff] %v949_v27  ;;  %v955_v30 = vld [vmem:[%s2696_s0 + $0x360] sm:$0xff] }
  0x10   :  { %v953_v29 = vld [vmem:[%s2696_s0 + $0x670] sm:$0xff]  ;;  %952 = vst [vmem:[%s2697_s1 + $0x2b0] sm:$0xff] %v951_v28  ;;  %v957_v31 = vld [vmem:[%s2696_s0 + $0x6e0] sm:$0xff]  ;;  %956 = vst [vmem:[%s2697_s1 + $0x320] sm:$0xff] %v955_v30 }
  0x11   :  { %954 = vst [vmem:[%s2697_s1 + $0x630] sm:$0xff] %v953_v29  ;;  %v959_v32 = vld [vmem:[%s2696_s0 + $0x40] sm:$0xff]  ;;  %958 = vst [vmem:[%s2697_s1 + $0x6a0] sm:$0xff] %v957_v31  ;;  %v963_v34 = vld [vmem:[%s2696_s0 + $0xb0] sm:$0xff] }
  0x12   :  { %960 = vst [vmem:[%s2697_s1 + $0x20] sm:$0xff] %v959_v32  ;;  %v961_v33 = vld [vmem:[%s2696_s0 + $0x3c0] sm:$0xff]  ;;  %v965_v35 = vld [vmem:[%s2696_s0 + $0x430] sm:$0xff]  ;;  %964 = vst [vmem:[%s2697_s1 + $0x90] sm:$0xff] %v963_v34 }
  0x13   :  { %962 = vst [vmem:[%s2697_s1 + $0x3a0] sm:$0xff] %v961_v33  ;;  %966 = vst [vmem:[%s2697_s1 + $0x410] sm:$0xff] %v965_v35  ;;  %v967_v36 = vld [vmem:[%s2696_s0 + $0x120] sm:$0xff]  ;;  %v971_v38 = vld [vmem:[%s2696_s0 + $0x190] sm:$0xff] }
  0x14   :  { %v969_v37 = vld [vmem:[%s2696_s0 + $0x4a0] sm:$0xff]  ;;  %968 = vst [vmem:[%s2697_s1 + $0x100] sm:$0xff] %v967_v36  ;;  %972 = vst [vmem:[%s2697_s1 + $0x170] sm:$0xff] %v971_v38  ;;  %v973_v39 = vld [vmem:[%s2696_s0 + $0x510] sm:$0xff] }
  0x15   :  { %970 = vst [vmem:[%s2697_s1 + $0x480] sm:$0xff] %v969_v37  ;;  %v975_v40 = vld [vmem:[%s2696_s0 + $0x200] sm:$0xff]  ;;  %974 = vst [vmem:[%s2697_s1 + $0x4f0] sm:$0xff] %v973_v39  ;;  %v979_v42 = vld [vmem:[%s2696_s0 + $0x270] sm:$0xff] }
  0x16   :  { %v977_v41 = vld [vmem:[%s2696_s0 + $0x580] sm:$0xff]  ;;  %976 = vst [vmem:[%s2697_s1 + $0x1e0] sm:$0xff] %v975_v40  ;;  %v981_v43 = vld [vmem:[%s2696_s0 + $0x5f0] sm:$0xff]  ;;  %980 = vst [vmem:[%s2697_s1 + $0x250] sm:$0xff] %v979_v42 }
  0x17   :  { %978 = vst [vmem:[%s2697_s1 + $0x560] sm:$0xff] %v977_v41  ;;  %v983_v44 = vld [vmem:[%s2696_s0 + $0x2e0] sm:$0xff]  ;;  %982 = vst [vmem:[%s2697_s1 + $0x5d0] sm:$0xff] %v981_v43  ;;  %v987_v46 = vld [vmem:[%s2696_s0 + $0x350] sm:$0xff] }
  0x18   :  { %984 = vst [vmem:[%s2697_s1 + $0x2c0] sm:$0xff] %v983_v44  ;;  %v985_v45 = vld [vmem:[%s2696_s0 + $0x660] sm:$0xff]  ;;  %v989_v47 = vld [vmem:[%s2696_s0 + $0x6d0] sm:$0xff]  ;;  %988 = vst [vmem:[%s2697_s1 + $0x330] sm:$0xff] %v987_v46 }
  0x19   :  { %986 = vst [vmem:[%s2697_s1 + $0x640] sm:$0xff] %v985_v45  ;;  %990 = vst [vmem:[%s2697_s1 + $0x6b0] sm:$0xff] %v989_v47  ;;  %v991_v48 = vld [vmem:[%s2696_s0 + $0x30] sm:$0xff]  ;;  %v995_v50 = vld [vmem:[%s2696_s0 + $0xa0] sm:$0xff] }
  0x1a   :  { %v993_v49 = vld [vmem:[%s2696_s0 + $0x3b0] sm:$0xff]  ;;  %992 = vst [vmem:[%s2697_s1 + $0x30] sm:$0xff] %v991_v48  ;;  %996 = vst [vmem:[%s2697_s1 + $0xa0] sm:$0xff] %v995_v50  ;;  %v997_v51 = vld [vmem:[%s2696_s0 + $0x420] sm:$0xff] }
  0x1b   :  { %994 = vst [vmem:[%s2697_s1 + $0x3b0] sm:$0xff] %v993_v49  ;;  %v999_v52 = vld [vmem:[%s2696_s0 + $0x110] sm:$0xff]  ;;  %998 = vst [vmem:[%s2697_s1 + $0x420] sm:$0xff] %v997_v51  ;;  %v1003_v54 = vld [vmem:[%s2696_s0 + $0x180] sm:$0xff] }
  0x1c   :  { %v1001_v53 = vld [vmem:[%s2696_s0 + $0x490] sm:$0xff]  ;;  %1000 = vst [vmem:[%s2697_s1 + $0x110] sm:$0xff] %v999_v52  ;;  %v1005_v55 = vld [vmem:[%s2696_s0 + $0x500] sm:$0xff]  ;;  %1004 = vst [vmem:[%s2697_s1 + $0x180] sm:$0xff] %v1003_v54 }
  0x1d   :  { %1002 = vst [vmem:[%s2697_s1 + $0x490] sm:$0xff] %v1001_v53  ;;  %v1007_v56 = vld [vmem:[%s2696_s0 + $0x1f0] sm:$0xff]  ;;  %1006 = vst [vmem:[%s2697_s1 + $0x500] sm:$0xff] %v1005_v55  ;;  %v1011_v58 = vld [vmem:[%s2696_s0 + $0x260] sm:$0xff] }
  0x1e   :  { %1008 = vst [vmem:[%s2697_s1 + $0x1f0] sm:$0xff] %v1007_v56  ;;  %v1009_v57 = vld [vmem:[%s2696_s0 + $0x570] sm:$0xff]  ;;  %v1013_v59 = vld [vmem:[%s2696_s0 + $0x5e0] sm:$0xff]  ;;  %1012 = vst [vmem:[%s2697_s1 + $0x260] sm:$0xff] %v1011_v58 }
  0x1f   :  { %1010 = vst [vmem:[%s2697_s1 + $0x570] sm:$0xff] %v1009_v57  ;;  %1014 = vst [vmem:[%s2697_s1 + $0x5e0] sm:$0xff] %v1013_v59  ;;  %v1015_v60 = vld [vmem:[%s2696_s0 + $0x2d0] sm:$0xff]  ;;  %v1019_v62 = vld [vmem:[%s2696_s0 + $0x340] sm:$0xff] }
  0x20   :  { %v1017_v61 = vld [vmem:[%s2696_s0 + $0x650] sm:$0xff]  ;;  %1016 = vst [vmem:[%s2697_s1 + $0x2d0] sm:$0xff] %v1015_v60  ;;  %1020 = vst [vmem:[%s2697_s1 + $0x340] sm:$0xff] %v1019_v62  ;;  %v1021_v63 = vld [vmem:[%s2696_s0 + $0x6c0] sm:$0xff] }
  0x21   :  { %1018 = vst [vmem:[%s2697_s1 + $0x650] sm:$0xff] %v1017_v61  ;;  %v1023_v0 = vld [vmem:[%s2696_s0 + $0x20] sm:$0xff]  ;;  %1022 = vst [vmem:[%s2697_s1 + $0x6c0] sm:$0xff] %v1021_v63  ;;  %v1027_v2 = vld [vmem:[%s2696_s0 + $0x90] sm:$0xff] }
  0x22   :  { %v1025_v1 = vld [vmem:[%s2696_s0 + $0x3a0] sm:$0xff]  ;;  %1024 = vst [vmem:[%s2697_s1 + $0x40] sm:$0xff] %v1023_v0  ;;  %v1029_v3 = vld [vmem:[%s2696_s0 + $0x410] sm:$0xff]  ;;  %1028 = vst [vmem:[%s2697_s1 + $0xb0] sm:$0xff] %v1027_v2 }
  0x23   :  { %1026 = vst [vmem:[%s2697_s1 + $0x3c0] sm:$0xff] %v1025_v1  ;;  %v1031_v4 = vld [vmem:[%s2696_s0 + $0x100] sm:$0xff]  ;;  %1030 = vst [vmem:[%s2697_s1 + $0x430] sm:$0xff] %v1029_v3  ;;  %v1035_v6 = vld [vmem:[%s2696_s0 + $0x170] sm:$0xff] }
  0x24   :  { %1032 = vst [vmem:[%s2697_s1 + $0x120] sm:$0xff] %v1031_v4  ;;  %v1033_v5 = vld [vmem:[%s2696_s0 + $0x480] sm:$0xff]  ;;  %v1037_v7 = vld [vmem:[%s2696_s0 + $0x4f0] sm:$0xff]  ;;  %1036 = vst [vmem:[%s2697_s1 + $0x190] sm:$0xff] %v1035_v6 }
  0x25   :  { %1034 = vst [vmem:[%s2697_s1 + $0x4a0] sm:$0xff] %v1033_v5  ;;  %1038 = vst [vmem:[%s2697_s1 + $0x510] sm:$0xff] %v1037_v7  ;;  %v1039_v8 = vld [vmem:[%s2696_s0 + $0x1e0] sm:$0xff]  ;;  %v1043_v10 = vld [vmem:[%s2696_s0 + $0x250] sm:$0xff] }
  0x26   :  { %v1041_v9 = vld [vmem:[%s2696_s0 + $0x560] sm:$0xff]  ;;  %1040 = vst [vmem:[%s2697_s1 + $0x200] sm:$0xff] %v1039_v8  ;;  %1044 = vst [vmem:[%s2697_s1 + $0x270] sm:$0xff] %v1043_v10  ;;  %v1045_v11 = vld [vmem:[%s2696_s0 + $0x5d0] sm:$0xff] }
  0x27   :  { %1042 = vst [vmem:[%s2697_s1 + $0x580] sm:$0xff] %v1041_v9  ;;  %v1047_v12 = vld [vmem:[%s2696_s0 + $0x2c0] sm:$0xff]  ;;  %1046 = vst [vmem:[%s2697_s1 + $0x5f0] sm:$0xff] %v1045_v11  ;;  %v1051_v14 = vld [vmem:[%s2696_s0 + $0x330] sm:$0xff] }
  0x28   :  { %v1049_v13 = vld [vmem:[%s2696_s0 + $0x640] sm:$0xff]  ;;  %1048 = vst [vmem:[%s2697_s1 + $0x2e0] sm:$0xff] %v1047_v12  ;;  %v1053_v15 = vld [vmem:[%s2696_s0 + $0x6b0] sm:$0xff]  ;;  %1052 = vst [vmem:[%s2697_s1 + $0x350] sm:$0xff] %v1051_v14 }
  0x29   :  { %1050 = vst [vmem:[%s2697_s1 + $0x660] sm:$0xff] %v1049_v13  ;;  %v1055_v16 = vld [vmem:[%s2696_s0 + $0x10] sm:$0xff]  ;;  %1054 = vst [vmem:[%s2697_s1 + $0x6d0] sm:$0xff] %v1053_v15  ;;  %v1059_v18 = vld [vmem:[%s2696_s0 + $0x80] sm:$0xff] }
  0x2a   :  { %1056 = vst [vmem:[%s2697_s1 + $0x50] sm:$0xff] %v1055_v16  ;;  %v1057_v17 = vld [vmem:[%s2696_s0 + $0x390] sm:$0xff]  ;;  %v1061_v19 = vld [vmem:[%s2696_s0 + $0x400] sm:$0xff]  ;;  %1060 = vst [vmem:[%s2697_s1 + $0xc0] sm:$0xff] %v1059_v18 }
  0x2b   :  { %1058 = vst [vmem:[%s2697_s1 + $0x3d0] sm:$0xff] %v1057_v17  ;;  %1062 = vst [vmem:[%s2697_s1 + $0x440] sm:$0xff] %v1061_v19  ;;  %v1063_v20 = vld [vmem:[%s2696_s0 + $0xf0] sm:$0xff]  ;;  %v1067_v22 = vld [vmem:[%s2696_s0 + $0x160] sm:$0xff] }
  0x2c   :  { %v1065_v21 = vld [vmem:[%s2696_s0 + $0x470] sm:$0xff]  ;;  %1064 = vst [vmem:[%s2697_s1 + $0x130] sm:$0xff] %v1063_v20  ;;  %1068 = vst [vmem:[%s2697_s1 + $0x1a0] sm:$0xff] %v1067_v22  ;;  %v1069_v23 = vld [vmem:[%s2696_s0 + $0x4e0] sm:$0xff] }
  0x2d   :  { %1066 = vst [vmem:[%s2697_s1 + $0x4b0] sm:$0xff] %v1065_v21  ;;  %v1071_v24 = vld [vmem:[%s2696_s0 + $0x1d0] sm:$0xff]  ;;  %1070 = vst [vmem:[%s2697_s1 + $0x520] sm:$0xff] %v1069_v23  ;;  %v1075_v26 = vld [vmem:[%s2696_s0 + $0x240] sm:$0xff] }
  0x2e   :  { %v1073_v25 = vld [vmem:[%s2696_s0 + $0x550] sm:$0xff]  ;;  %1072 = vst [vmem:[%s2697_s1 + $0x210] sm:$0xff] %v1071_v24  ;;  %v1077_v27 = vld [vmem:[%s2696_s0 + $0x5c0] sm:$0xff]  ;;  %1076 = vst [vmem:[%s2697_s1 + $0x280] sm:$0xff] %v1075_v26 }
  0x2f   :  { %1074 = vst [vmem:[%s2697_s1 + $0x590] sm:$0xff] %v1073_v25  ;;  %v1079_v28 = vld [vmem:[%s2696_s0 + $0x2b0] sm:$0xff]  ;;  %1078 = vst [vmem:[%s2697_s1 + $0x600] sm:$0xff] %v1077_v27  ;;  %v1083_v30 = vld [vmem:[%s2696_s0 + $0x320] sm:$0xff] }
  0x30   :  { %1080 = vst [vmem:[%s2697_s1 + $0x2f0] sm:$0xff] %v1079_v28  ;;  %v1081_v29 = vld [vmem:[%s2696_s0 + $0x630] sm:$0xff]  ;;  %v1085_v31 = vld [vmem:[%s2696_s0 + $0x6a0] sm:$0xff]  ;;  %1084 = vst [vmem:[%s2697_s1 + $0x360] sm:$0xff] %v1083_v30 }
  0x31   :  { %1082 = vst [vmem:[%s2697_s1 + $0x670] sm:$0xff] %v1081_v29  ;;  %1086 = vst [vmem:[%s2697_s1 + $0x6e0] sm:$0xff] %v1085_v31  ;;  %v385_v32 = vld [vmem:[%s2696_s0] sm:$0xff]  ;;  %v1090_v34 = vld [vmem:[%s2696_s0 + $0x70] sm:$0xff] }
  0x32   :  { %v1088_v33 = vld [vmem:[%s2696_s0 + $0x380] sm:$0xff]  ;;  %1087 = vst [vmem:[%s2697_s1 + $0x60] sm:$0xff] %v385_v32  ;;  %1091 = vst [vmem:[%s2697_s1 + $0xd0] sm:$0xff] %v1090_v34  ;;  %v1092_v35 = vld [vmem:[%s2696_s0 + $0x3f0] sm:$0xff] }
  0x33   :  { %1089 = vst [vmem:[%s2697_s1 + $0x3e0] sm:$0xff] %v1088_v33  ;;  %v1094_v36 = vld [vmem:[%s2696_s0 + $0xe0] sm:$0xff]  ;;  %1093 = vst [vmem:[%s2697_s1 + $0x450] sm:$0xff] %v1092_v35  ;;  %v1098_v38 = vld [vmem:[%s2696_s0 + $0x150] sm:$0xff] }
  0x34   :  { %v1096_v37 = vld [vmem:[%s2696_s0 + $0x460] sm:$0xff]  ;;  %1095 = vst [vmem:[%s2697_s1 + $0x140] sm:$0xff] %v1094_v36  ;;  %v1100_v39 = vld [vmem:[%s2696_s0 + $0x4d0] sm:$0xff]  ;;  %1099 = vst [vmem:[%s2697_s1 + $0x1b0] sm:$0xff] %v1098_v38 }
  0x35   :  { %1097 = vst [vmem:[%s2697_s1 + $0x4c0] sm:$0xff] %v1096_v37  ;;  %v1102_v40 = vld [vmem:[%s2696_s0 + $0x1c0] sm:$0xff]  ;;  %1101 = vst [vmem:[%s2697_s1 + $0x530] sm:$0xff] %v1100_v39  ;;  %v1106_v42 = vld [vmem:[%s2696_s0 + $0x230] sm:$0xff] }
  0x36   :  { %1103 = vst [vmem:[%s2697_s1 + $0x220] sm:$0xff] %v1102_v40  ;;  %v1104_v41 = vld [vmem:[%s2696_s0 + $0x540] sm:$0xff]  ;;  %v1108_v43 = vld [vmem:[%s2696_s0 + $0x5b0] sm:$0xff]  ;;  %1107 = vst [vmem:[%s2697_s1 + $0x290] sm:$0xff] %v1106_v42 }
  0x37   :  { %1105 = vst [vmem:[%s2697_s1 + $0x5a0] sm:$0xff] %v1104_v41  ;;  %1109 = vst [vmem:[%s2697_s1 + $0x610] sm:$0xff] %v1108_v43  ;;  %v1110_v44 = vld [vmem:[%s2696_s0 + $0x2a0] sm:$0xff]  ;;  %v1114_v46 = vld [vmem:[%s2696_s0 + $0x310] sm:$0xff] }
  0x38   :  { %v1112_v45 = vld [vmem:[%s2696_s0 + $0x620] sm:$0xff]  ;;  %1111 = vst [vmem:[%s2697_s1 + $0x300] sm:$0xff] %v1110_v44  ;;  %1115 = vst [vmem:[%s2697_s1 + $0x370] sm:$0xff] %v1114_v46  ;;  %v1116_v47 = vld [vmem:[%s2696_s0 + $0x690] sm:$0xff] }
  0x39   :  { %1113 = vst [vmem:[%s2697_s1 + $0x680] sm:$0xff] %v1112_v45  ;;  %v1118_v48 = vld [vmem:[%s2696_s0 + $0x68] sm:$0xff]  ;;  %1117 = vst [vmem:[%s2697_s1 + $0x6f0] sm:$0xff] %v1116_v47  ;;  %v1122_v50 = vld [vmem:[%s2696_s0 + $0xd8] sm:$0xff] }
  0x3a   :  { %v1120_v49 = vld [vmem:[%s2696_s0 + $0x3e8] sm:$0xff]  ;;  %1119 = vst [vmem:[%s2697_s1 + $0x8] sm:$0xff] %v1118_v48  ;;  %v1124_v51 = vld [vmem:[%s2696_s0 + $0x458] sm:$0xff]  ;;  %1123 = vst [vmem:[%s2697_s1 + $0x78] sm:$0xff] %v1122_v50 }
  0x3b   :  { %1121 = vst [vmem:[%s2697_s1 + $0x388] sm:$0xff] %v1120_v49  ;;  %v1126_v52 = vld [vmem:[%s2696_s0 + $0x148] sm:$0xff]  ;;  %1125 = vst [vmem:[%s2697_s1 + $0x3f8] sm:$0xff] %v1124_v51  ;;  %v1130_v54 = vld [vmem:[%s2696_s0 + $0x1b8] sm:$0xff] }
  0x3c   :  { %1127 = vst [vmem:[%s2697_s1 + $0xe8] sm:$0xff] %v1126_v52  ;;  %v1128_v53 = vld [vmem:[%s2696_s0 + $0x4c8] sm:$0xff]  ;;  %v1132_v55 = vld [vmem:[%s2696_s0 + $0x538] sm:$0xff]  ;;  %1131 = vst [vmem:[%s2697_s1 + $0x158] sm:$0xff] %v1130_v54 }
  0x3d   :  { %1129 = vst [vmem:[%s2697_s1 + $0x468] sm:$0xff] %v1128_v53  ;;  %1133 = vst [vmem:[%s2697_s1 + $0x4d8] sm:$0xff] %v1132_v55  ;;  %v1134_v56 = vld [vmem:[%s2696_s0 + $0x228] sm:$0xff]  ;;  %v1138_v58 = vld [vmem:[%s2696_s0 + $0x298] sm:$0xff] }
  0x3e   :  { %v1136_v57 = vld [vmem:[%s2696_s0 + $0x5a8] sm:$0xff]  ;;  %1135 = vst [vmem:[%s2697_s1 + $0x1c8] sm:$0xff] %v1134_v56  ;;  %1139 = vst [vmem:[%s2697_s1 + $0x238] sm:$0xff] %v1138_v58  ;;  %v1140_v59 = vld [vmem:[%s2696_s0 + $0x618] sm:$0xff] }
  0x3f   :  { %1137 = vst [vmem:[%s2697_s1 + $0x548] sm:$0xff] %v1136_v57  ;;  %v1142_v60 = vld [vmem:[%s2696_s0 + $0x308] sm:$0xff]  ;;  %1141 = vst [vmem:[%s2697_s1 + $0x5b8] sm:$0xff] %v1140_v59  ;;  %v1146_v62 = vld [vmem:[%s2696_s0 + $0x378] sm:$0xff] }
  0x40   :  { %v1144_v61 = vld [vmem:[%s2696_s0 + $0x688] sm:$0xff]  ;;  %1143 = vst [vmem:[%s2697_s1 + $0x2a8] sm:$0xff] %v1142_v60  ;;  %v1148_v63 = vld [vmem:[%s2696_s0 + $0x6f8] sm:$0xff]  ;;  %1147 = vst [vmem:[%s2697_s1 + $0x318] sm:$0xff] %v1146_v62 }
  0x41   :  { %1145 = vst [vmem:[%s2697_s1 + $0x628] sm:$0xff] %v1144_v61  ;;  %v1150_v0 = vld [vmem:[%s2696_s0 + $0x58] sm:$0xff]  ;;  %1149 = vst [vmem:[%s2697_s1 + $0x698] sm:$0xff] %v1148_v63  ;;  %v1154_v2 = vld [vmem:[%s2696_s0 + $0xc8] sm:$0xff] }
  0x42   :  { %1151 = vst [vmem:[%s2697_s1 + $0x18] sm:$0xff] %v1150_v0  ;;  %v1152_v1 = vld [vmem:[%s2696_s0 + $0x3d8] sm:$0xff]  ;;  %v1156_v3 = vld [vmem:[%s2696_s0 + $0x448] sm:$0xff]  ;;  %1155 = vst [vmem:[%s2697_s1 + $0x88] sm:$0xff] %v1154_v2 }
  0x43   :  { %1153 = vst [vmem:[%s2697_s1 + $0x398] sm:$0xff] %v1152_v1  ;;  %1157 = vst [vmem:[%s2697_s1 + $0x408] sm:$0xff] %v1156_v3  ;;  %v1158_v4 = vld [vmem:[%s2696_s0 + $0x138] sm:$0xff]  ;;  %v1162_v6 = vld [vmem:[%s2696_s0 + $0x1a8] sm:$0xff] }
  0x44   :  { %v1160_v5 = vld [vmem:[%s2696_s0 + $0x4b8] sm:$0xff]  ;;  %1159 = vst [vmem:[%s2697_s1 + $0xf8] sm:$0xff] %v1158_v4  ;;  %1163 = vst [vmem:[%s2697_s1 + $0x168] sm:$0xff] %v1162_v6  ;;  %v1164_v7 = vld [vmem:[%s2696_s0 + $0x528] sm:$0xff] }
  0x45   :  { %1161 = vst [vmem:[%s2697_s1 + $0x478] sm:$0xff] %v1160_v5  ;;  %v1166_v8 = vld [vmem:[%s2696_s0 + $0x218] sm:$0xff]  ;;  %1165 = vst [vmem:[%s2697_s1 + $0x4e8] sm:$0xff] %v1164_v7  ;;  %v1170_v10 = vld [vmem:[%s2696_s0 + $0x288] sm:$0xff] }
  0x46   :  { %v1168_v9 = vld [vmem:[%s2696_s0 + $0x598] sm:$0xff]  ;;  %1167 = vst [vmem:[%s2697_s1 + $0x1d8] sm:$0xff] %v1166_v8  ;;  %v1172_v11 = vld [vmem:[%s2696_s0 + $0x608] sm:$0xff]  ;;  %1171 = vst [vmem:[%s2697_s1 + $0x248] sm:$0xff] %v1170_v10 }
  0x47   :  { %1169 = vst [vmem:[%s2697_s1 + $0x558] sm:$0xff] %v1168_v9  ;;  %v1174_v12 = vld [vmem:[%s2696_s0 + $0x2f8] sm:$0xff]  ;;  %1173 = vst [vmem:[%s2697_s1 + $0x5c8] sm:$0xff] %v1172_v11  ;;  %v1178_v14 = vld [vmem:[%s2696_s0 + $0x368] sm:$0xff] }
  0x48   :  { %1175 = vst [vmem:[%s2697_s1 + $0x2b8] sm:$0xff] %v1174_v12  ;;  %v1176_v13 = vld [vmem:[%s2696_s0 + $0x678] sm:$0xff]  ;;  %v1180_v15 = vld [vmem:[%s2696_s0 + $0x6e8] sm:$0xff]  ;;  %1179 = vst [vmem:[%s2697_s1 + $0x328] sm:$0xff] %v1178_v14 }
  0x49   :  { %1177 = vst [vmem:[%s2697_s1 + $0x638] sm:$0xff] %v1176_v13  ;;  %1181 = vst [vmem:[%s2697_s1 + $0x6a8] sm:$0xff] %v1180_v15  ;;  %v1182_v16 = vld [vmem:[%s2696_s0 + $0x48] sm:$0xff]  ;;  %v1186_v18 = vld [vmem:[%s2696_s0 + $0xb8] sm:$0xff] }
  0x4a   :  { %v1184_v17 = vld [vmem:[%s2696_s0 + $0x3c8] sm:$0xff]  ;;  %1183 = vst [vmem:[%s2697_s1 + $0x28] sm:$0xff] %v1182_v16  ;;  %1187 = vst [vmem:[%s2697_s1 + $0x98] sm:$0xff] %v1186_v18  ;;  %v1188_v19 = vld [vmem:[%s2696_s0 + $0x438] sm:$0xff] }
  0x4b   :  { %1185 = vst [vmem:[%s2697_s1 + $0x3a8] sm:$0xff] %v1184_v17  ;;  %v1190_v20 = vld [vmem:[%s2696_s0 + $0x128] sm:$0xff]  ;;  %1189 = vst [vmem:[%s2697_s1 + $0x418] sm:$0xff] %v1188_v19  ;;  %v1194_v22 = vld [vmem:[%s2696_s0 + $0x198] sm:$0xff] }
  0x4c   :  { %v1192_v21 = vld [vmem:[%s2696_s0 + $0x4a8] sm:$0xff]  ;;  %1191 = vst [vmem:[%s2697_s1 + $0x108] sm:$0xff] %v1190_v20  ;;  %v1196_v23 = vld [vmem:[%s2696_s0 + $0x518] sm:$0xff]  ;;  %1195 = vst [vmem:[%s2697_s1 + $0x178] sm:$0xff] %v1194_v22 }
  0x4d   :  { %1193 = vst [vmem:[%s2697_s1 + $0x488] sm:$0xff] %v1192_v21  ;;  %v1198_v24 = vld [vmem:[%s2696_s0 + $0x208] sm:$0xff]  ;;  %1197 = vst [vmem:[%s2697_s1 + $0x4f8] sm:$0xff] %v1196_v23  ;;  %v1202_v26 = vld [vmem:[%s2696_s0 + $0x278] sm:$0xff] }
  0x4e   :  { %1199 = vst [vmem:[%s2697_s1 + $0x1e8] sm:$0xff] %v1198_v24  ;;  %v1200_v25 = vld [vmem:[%s2696_s0 + $0x588] sm:$0xff]  ;;  %v1204_v27 = vld [vmem:[%s2696_s0 + $0x5f8] sm:$0xff]  ;;  %1203 = vst [vmem:[%s2697_s1 + $0x258] sm:$0xff] %v1202_v26 }
  0x4f   :  { %1201 = vst [vmem:[%s2697_s1 + $0x568] sm:$0xff] %v1200_v25  ;;  %1205 = vst [vmem:[%s2697_s1 + $0x5d8] sm:$0xff] %v1204_v27  ;;  %v1206_v28 = vld [vmem:[%s2696_s0 + $0x2e8] sm:$0xff]  ;;  %v1210_v30 = vld [vmem:[%s2696_s0 + $0x358] sm:$0xff] }
  0x50   :  { %v1208_v29 = vld [vmem:[%s2696_s0 + $0x668] sm:$0xff]  ;;  %1207 = vst [vmem:[%s2697_s1 + $0x2c8] sm:$0xff] %v1206_v28  ;;  %1211 = vst [vmem:[%s2697_s1 + $0x338] sm:$0xff] %v1210_v30  ;;  %v1212_v31 = vld [vmem:[%s2696_s0 + $0x6d8] sm:$0xff] }
  0x51   :  { %1209 = vst [vmem:[%s2697_s1 + $0x648] sm:$0xff] %v1208_v29  ;;  %v1214_v32 = vld [vmem:[%s2696_s0 + $0x38] sm:$0xff]  ;;  %1213 = vst [vmem:[%s2697_s1 + $0x6b8] sm:$0xff] %v1212_v31  ;;  %v1218_v34 = vld [vmem:[%s2696_s0 + $0xa8] sm:$0xff] }
  0x52   :  { %v1216_v33 = vld [vmem:[%s2696_s0 + $0x3b8] sm:$0xff]  ;;  %1215 = vst [vmem:[%s2697_s1 + $0x38] sm:$0xff] %v1214_v32  ;;  %v1220_v35 = vld [vmem:[%s2696_s0 + $0x428] sm:$0xff]  ;;  %1219 = vst [vmem:[%s2697_s1 + $0xa8] sm:$0xff] %v1218_v34 }
  0x53   :  { %1217 = vst [vmem:[%s2697_s1 + $0x3b8] sm:$0xff] %v1216_v33  ;;  %v1222_v36 = vld [vmem:[%s2696_s0 + $0x118] sm:$0xff]  ;;  %1221 = vst [vmem:[%s2697_s1 + $0x428] sm:$0xff] %v1220_v35  ;;  %v1226_v38 = vld [vmem:[%s2696_s0 + $0x188] sm:$0xff] }
  0x54   :  { %1223 = vst [vmem:[%s2697_s1 + $0x118] sm:$0xff] %v1222_v36  ;;  %v1224_v37 = vld [vmem:[%s2696_s0 + $0x498] sm:$0xff]  ;;  %v1228_v39 = vld [vmem:[%s2696_s0 + $0x508] sm:$0xff]  ;;  %1227 = vst [vmem:[%s2697_s1 + $0x188] sm:$0xff] %v1226_v38 }
  0x55   :  { %1225 = vst [vmem:[%s2697_s1 + $0x498] sm:$0xff] %v1224_v37  ;;  %1229 = vst [vmem:[%s2697_s1 + $0x508] sm:$0xff] %v1228_v39  ;;  %v1230_v40 = vld [vmem:[%s2696_s0 + $0x1f8] sm:$0xff]  ;;  %v1234_v42 = vld [vmem:[%s2696_s0 + $0x268] sm:$0xff] }
  0x56   :  { %v1232_v41 = vld [vmem:[%s2696_s0 + $0x578] sm:$0xff]  ;;  %1231 = vst [vmem:[%s2697_s1 + $0x1f8] sm:$0xff] %v1230_v40  ;;  %1235 = vst [vmem:[%s2697_s1 + $0x268] sm:$0xff] %v1234_v42  ;;  %v1236_v43 = vld [vmem:[%s2696_s0 + $0x5e8] sm:$0xff] }
  0x57   :  { %1233 = vst [vmem:[%s2697_s1 + $0x578] sm:$0xff] %v1232_v41  ;;  %v1238_v44 = vld [vmem:[%s2696_s0 + $0x2d8] sm:$0xff]  ;;  %1237 = vst [vmem:[%s2697_s1 + $0x5e8] sm:$0xff] %v1236_v43  ;;  %v1242_v46 = vld [vmem:[%s2696_s0 + $0x348] sm:$0xff] }
  0x58   :  { %v1240_v45 = vld [vmem:[%s2696_s0 + $0x658] sm:$0xff]  ;;  %1239 = vst [vmem:[%s2697_s1 + $0x2d8] sm:$0xff] %v1238_v44  ;;  %v1244_v47 = vld [vmem:[%s2696_s0 + $0x6c8] sm:$0xff]  ;;  %1243 = vst [vmem:[%s2697_s1 + $0x348] sm:$0xff] %v1242_v46 }
  0x59   :  { %1241 = vst [vmem:[%s2697_s1 + $0x658] sm:$0xff] %v1240_v45  ;;  %v1246_v48 = vld [vmem:[%s2696_s0 + $0x28] sm:$0xff]  ;;  %1245 = vst [vmem:[%s2697_s1 + $0x6c8] sm:$0xff] %v1244_v47  ;;  %v1250_v50 = vld [vmem:[%s2696_s0 + $0x98] sm:$0xff] }
  0x5a   :  { %1247 = vst [vmem:[%s2697_s1 + $0x48] sm:$0xff] %v1246_v48  ;;  %v1248_v49 = vld [vmem:[%s2696_s0 + $0x3a8] sm:$0xff]  ;;  %v1252_v51 = vld [vmem:[%s2696_s0 + $0x418] sm:$0xff]  ;;  %1251 = vst [vmem:[%s2697_s1 + $0xb8] sm:$0xff] %v1250_v50 }
  0x5b   :  { %1249 = vst [vmem:[%s2697_s1 + $0x3c8] sm:$0xff] %v1248_v49  ;;  %1253 = vst [vmem:[%s2697_s1 + $0x438] sm:$0xff] %v1252_v51  ;;  %v1254_v52 = vld [vmem:[%s2696_s0 + $0x108] sm:$0xff]  ;;  %v1258_v54 = vld [vmem:[%s2696_s0 + $0x178] sm:$0xff] }
  0x5c   :  { %v1256_v53 = vld [vmem:[%s2696_s0 + $0x488] sm:$0xff]  ;;  %1255 = vst [vmem:[%s2697_s1 + $0x128] sm:$0xff] %v1254_v52  ;;  %1259 = vst [vmem:[%s2697_s1 + $0x198] sm:$0xff] %v1258_v54  ;;  %v1260_v55 = vld [vmem:[%s2696_s0 + $0x4f8] sm:$0xff] }
  0x5d   :  { %1257 = vst [vmem:[%s2697_s1 + $0x4a8] sm:$0xff] %v1256_v53  ;;  %v1262_v56 = vld [vmem:[%s2696_s0 + $0x1e8] sm:$0xff]  ;;  %1261 = vst [vmem:[%s2697_s1 + $0x518] sm:$0xff] %v1260_v55  ;;  %v1266_v58 = vld [vmem:[%s2696_s0 + $0x258] sm:$0xff] }
  0x5e   :  { %v1264_v57 = vld [vmem:[%s2696_s0 + $0x568] sm:$0xff]  ;;  %1263 = vst [vmem:[%s2697_s1 + $0x208] sm:$0xff] %v1262_v56  ;;  %v1268_v59 = vld [vmem:[%s2696_s0 + $0x5d8] sm:$0xff]  ;;  %1267 = vst [vmem:[%s2697_s1 + $0x278] sm:$0xff] %v1266_v58 }
  0x5f   :  { %1265 = vst [vmem:[%s2697_s1 + $0x588] sm:$0xff] %v1264_v57  ;;  %v1270_v60 = vld [vmem:[%s2696_s0 + $0x2c8] sm:$0xff]  ;;  %1269 = vst [vmem:[%s2697_s1 + $0x5f8] sm:$0xff] %v1268_v59  ;;  %v1274_v62 = vld [vmem:[%s2696_s0 + $0x338] sm:$0xff] }
  0x60   :  { %1271 = vst [vmem:[%s2697_s1 + $0x2e8] sm:$0xff] %v1270_v60  ;;  %v1272_v61 = vld [vmem:[%s2696_s0 + $0x648] sm:$0xff]  ;;  %v1276_v63 = vld [vmem:[%s2696_s0 + $0x6b8] sm:$0xff]  ;;  %1275 = vst [vmem:[%s2697_s1 + $0x358] sm:$0xff] %v1274_v62 }
  0x61   :  { %1273 = vst [vmem:[%s2697_s1 + $0x668] sm:$0xff] %v1272_v61  ;;  %1277 = vst [vmem:[%s2697_s1 + $0x6d8] sm:$0xff] %v1276_v63  ;;  %v1278_v0 = vld [vmem:[%s2696_s0 + $0x18] sm:$0xff]  ;;  %v1282_v2 = vld [vmem:[%s2696_s0 + $0x88] sm:$0xff] }
  0x62   :  { %v1280_v1 = vld [vmem:[%s2696_s0 + $0x398] sm:$0xff]  ;;  %1279 = vst [vmem:[%s2697_s1 + $0x58] sm:$0xff] %v1278_v0  ;;  %1283 = vst [vmem:[%s2697_s1 + $0xc8] sm:$0xff] %v1282_v2  ;;  %v1284_v3 = vld [vmem:[%s2696_s0 + $0x408] sm:$0xff] }
  0x63   :  { %1281 = vst [vmem:[%s2697_s1 + $0x3d8] sm:$0xff] %v1280_v1  ;;  %v1286_v4 = vld [vmem:[%s2696_s0 + $0xf8] sm:$0xff]  ;;  %1285 = vst [vmem:[%s2697_s1 + $0x448] sm:$0xff] %v1284_v3  ;;  %v1290_v6 = vld [vmem:[%s2696_s0 + $0x168] sm:$0xff] }
  0x64   :  { %v1288_v5 = vld [vmem:[%s2696_s0 + $0x478] sm:$0xff]  ;;  %1287 = vst [vmem:[%s2697_s1 + $0x138] sm:$0xff] %v1286_v4  ;;  %v1292_v7 = vld [vmem:[%s2696_s0 + $0x4e8] sm:$0xff]  ;;  %1291 = vst [vmem:[%s2697_s1 + $0x1a8] sm:$0xff] %v1290_v6 }
  0x65   :  { %1289 = vst [vmem:[%s2697_s1 + $0x4b8] sm:$0xff] %v1288_v5  ;;  %v1294_v8 = vld [vmem:[%s2696_s0 + $0x1d8] sm:$0xff]  ;;  %1293 = vst [vmem:[%s2697_s1 + $0x528] sm:$0xff] %v1292_v7  ;;  %v1298_v10 = vld [vmem:[%s2696_s0 + $0x248] sm:$0xff] }
  0x66   :  { %1295 = vst [vmem:[%s2697_s1 + $0x218] sm:$0xff] %v1294_v8  ;;  %v1296_v9 = vld [vmem:[%s2696_s0 + $0x558] sm:$0xff]  ;;  %v1300_v11 = vld [vmem:[%s2696_s0 + $0x5c8] sm:$0xff]  ;;  %1299 = vst [vmem:[%s2697_s1 + $0x288] sm:$0xff] %v1298_v10 }
  0x67   :  { %1297 = vst [vmem:[%s2697_s1 + $0x598] sm:$0xff] %v1296_v9  ;;  %1301 = vst [vmem:[%s2697_s1 + $0x608] sm:$0xff] %v1300_v11  ;;  %v1302_v12 = vld [vmem:[%s2696_s0 + $0x2b8] sm:$0xff]  ;;  %v1306_v14 = vld [vmem:[%s2696_s0 + $0x328] sm:$0xff] }
  0x68   :  { %v1304_v13 = vld [vmem:[%s2696_s0 + $0x638] sm:$0xff]  ;;  %1303 = vst [vmem:[%s2697_s1 + $0x2f8] sm:$0xff] %v1302_v12  ;;  %1307 = vst [vmem:[%s2697_s1 + $0x368] sm:$0xff] %v1306_v14  ;;  %v1308_v15 = vld [vmem:[%s2696_s0 + $0x6a8] sm:$0xff] }
  0x69   :  { %1305 = vst [vmem:[%s2697_s1 + $0x678] sm:$0xff] %v1304_v13  ;;  %v1310_v16 = vld [vmem:[%s2696_s0 + $0x8] sm:$0xff]  ;;  %1309 = vst [vmem:[%s2697_s1 + $0x6e8] sm:$0xff] %v1308_v15  ;;  %v1314_v18 = vld [vmem:[%s2696_s0 + $0x78] sm:$0xff] }
  0x6a   :  { %v1312_v17 = vld [vmem:[%s2696_s0 + $0x388] sm:$0xff]  ;;  %1311 = vst [vmem:[%s2697_s1 + $0x68] sm:$0xff] %v1310_v16  ;;  %v1316_v19 = vld [vmem:[%s2696_s0 + $0x3f8] sm:$0xff]  ;;  %1315 = vst [vmem:[%s2697_s1 + $0xd8] sm:$0xff] %v1314_v18 }
  0x6b   :  { %1313 = vst [vmem:[%s2697_s1 + $0x3e8] sm:$0xff] %v1312_v17  ;;  %v1318_v20 = vld [vmem:[%s2696_s0 + $0xe8] sm:$0xff]  ;;  %1317 = vst [vmem:[%s2697_s1 + $0x458] sm:$0xff] %v1316_v19  ;;  %v1322_v22 = vld [vmem:[%s2696_s0 + $0x158] sm:$0xff] }
  0x6c   :  { %1319 = vst [vmem:[%s2697_s1 + $0x148] sm:$0xff] %v1318_v20  ;;  %v1320_v21 = vld [vmem:[%s2696_s0 + $0x468] sm:$0xff]  ;;  %v1324_v23 = vld [vmem:[%s2696_s0 + $0x4d8] sm:$0xff]  ;;  %1323 = vst [vmem:[%s2697_s1 + $0x1b8] sm:$0xff] %v1322_v22 }
  0x6d   :  { %1321 = vst [vmem:[%s2697_s1 + $0x4c8] sm:$0xff] %v1320_v21  ;;  %1325 = vst [vmem:[%s2697_s1 + $0x538] sm:$0xff] %v1324_v23  ;;  %v1326_v24 = vld [vmem:[%s2696_s0 + $0x1c8] sm:$0xff]  ;;  %v1330_v26 = vld [vmem:[%s2696_s0 + $0x238] sm:$0xff] }
  0x6e   :  { %v1328_v25 = vld [vmem:[%s2696_s0 + $0x548] sm:$0xff]  ;;  %1327 = vst [vmem:[%s2697_s1 + $0x228] sm:$0xff] %v1326_v24  ;;  %1331 = vst [vmem:[%s2697_s1 + $0x298] sm:$0xff] %v1330_v26  ;;  %v1332_v27 = vld [vmem:[%s2696_s0 + $0x5b8] sm:$0xff] }
  0x6f   :  { %1329 = vst [vmem:[%s2697_s1 + $0x5a8] sm:$0xff] %v1328_v25  ;;  %v1334_v28 = vld [vmem:[%s2696_s0 + $0x2a8] sm:$0xff]  ;;  %1333 = vst [vmem:[%s2697_s1 + $0x618] sm:$0xff] %v1332_v27  ;;  %v1338_v30 = vld [vmem:[%s2696_s0 + $0x318] sm:$0xff] }
  0x70   :  { %v1336_v29 = vld [vmem:[%s2696_s0 + $0x628] sm:$0xff]  ;;  %1335 = vst [vmem:[%s2697_s1 + $0x308] sm:$0xff] %v1334_v28  ;;  %v1340_v31 = vld [vmem:[%s2696_s0 + $0x698] sm:$0xff]  ;;  %1339 = vst [vmem:[%s2697_s1 + $0x378] sm:$0xff] %v1338_v30 }
  0x71   :  { %1337 = vst [vmem:[%s2697_s1 + $0x688] sm:$0xff] %v1336_v29  ;;  %1341 = vst [vmem:[%s2697_s1 + $0x6f8] sm:$0xff] %v1340_v31 }

// kernel: fourier_block.3
= control target key start
LH: loop header
LB: loop body
LE: loop exit
PB: predicated region body
PF: predicated region fallthrough
CT: control target
= control target key end

     0   :  { %s742_s15 = smov 0   ;;  %s744_s16 = smov 0   ;;  %s825_s0 = inlined_call_operand.vmem [shape: f32[8,4], index: 0, kind: input, shape index: {}]   ;;  %s826_s1 = inlined_call_operand.vmem [shape: f32[8,1], index: 1, kind: input, shape index: {}]   ;;  %s827_s2 = inlined_call_operand.vmem [shape: f32[2,4,4096], index: 2, kind: input, shape index: {}]   ;;  %s828_s3 = inlined_call_operand.vmem [shape: f32[2,8,4096], index: 3, kind: input, shape index: {}]   ;;  %s829_s4 = inlined_call_operand.vmem [shape: f32[2,8,4096], index: 4, kind: output, shape index: {}]  }
   0x1   :  { %s746_s17 = smov 0   ;;  %s748_s18 = smov 0  }
   0x2   :  { %s750_s19 = smov 0  }
   0x3 LB: > { %s23_s20 = sadd.s32 1, %s703_s17  ;;  %s26_s21 = sadd.s32 1, %s707_s18  ;;  %s711_s19 = sphi %s750_s19, %s14_s19   ;;  %s707_s18 = sphi %s748_s18, %s833_s18   ;;  %s703_s17 = sphi %s746_s17, %s832_s17   ;;  %s699_s16 = sphi %s744_s16, %s831_s16   ;;  %s695_s15 = sphi %s742_s15, %s830_s15  }
   0x4   : > { %p24_p0 = scmp.ge.s32.totalorder %s23_s20, 8  ;;  %p605_p1 = scmp.ge.s32.totalorder %s711_s19, 1 }
   0x5   : > { %p200_p2 = scmp.lt.s32.totalorder %s711_s19, 17 }
   0x6   : > { %s835_s20 = smov (%p24_p0, %s23_s20), 0  ;;  %s837_s21 = smov (!%p24_p0, %s26_s21), %s707_s18 }
   0x7   : > { %p201_p3 = pnand %p605_p1, %p200_p2  ;;  %p28_p4 = scmp.ge.s32.totalorder %s837_s21, 2 }
   0x8   : > { %v279_v0 = vld [vmem:[%s826_s1] sm:$0xff] (!%p201_p3)  ;;  %v713_v2 = vmov (!%p201_p3), 0   ;;  %v714_v3 = vmov (!%p201_p3), 1   ;;  %v715_v4 = vmov (!%p201_p3), 2   ;;  %v716_v5 = vmov (!%p201_p3), 3   ;;  %s606_s26 = sshll.u32 (!%p201_p3), %s695_s15, 2 }
   0x9   : > { %s839_s21 = smov (%p28_p4, %s837_s21), 0  ;;  %204 = sbr.rel (%p201_p3) target bundleno = 168 (0xa8), region = 36 }
   0xa   : > { %v289_v1 = vld [vmem:[%s825_s0] sm:$0xff] (!%p201_p3)  ;;  %661 = vset.pattern.permute.xlu0 (!%p201_p3), %v713_v2  ;;  %662 = vset.pattern.permute.xlu1 (!%p201_p3), %v714_v3  ;;  %p244_p5 = scmp.lt.s32.totalorder (!%p201_p3), %s699_s16, 1  ;;  %p246_p6 = scmp.lt.s32.totalorder (!%p201_p3), %s606_s26, 31  ;;  %v297_v6 = vlaneseq (!%p201_p3) }
   0xb   : > { %282 = vperm.xlu0 (!%p201_p3), %661, %v279_v0   ;;  %342 = vperm.xlu1 (!%p201_p3), %662, %v289_v1  }
   0xc   : > { %v298_v7 = vshrl.u32 (!%p201_p3), %v297_v6, 7 }
   0xe   : > { %v347_v8 = vsub.s32 (!%p201_p3), 1, %v298_v7  ;;  %v351_v9 = vsub.s32 (!%p201_p3), 5, %v298_v7  ;;  %v299_v12 = vsub.s32 (!%p201_p3), 0, %v298_v7  ;;  %v303_v13 = vsub.s32 (!%p201_p3), 4, %v298_v7 }
   0xf   : > { %292 = vperm.xlu0 (!%p201_p3), %661, %v289_v1   ;;  %663 = vset.pattern.permute.xlu1 (!%p201_p3), %v715_v4  ;;  %v395_v14 = vsub.s32 (!%p201_p3), 2, %v298_v7  ;;  %v399_v15 = vsub.s32 (!%p201_p3), 6, %v298_v7  ;;  %v792_v16 = vsub.s32 (!%p201_p3), 3, %v298_v7  ;;  %v447_v17 = vsub.s32 (!%p201_p3), 7, %v298_v7 }
  0x10   : > { %390 = vperm.xlu1 %663, %v289_v1   ;;  %s841_s16 = smov (!%p244_p5, %s699_s16), 1  ;;  %s843_s26 = smov (!%p246_p6, %s606_s26), 31 }
  0x11   : > { %s607_s27 = sshll.u32 %s841_s16, 5 }
  0x12   : > { %s785_s28 = sadd.s32 %s607_s27, %s843_s26 }
  0x13   : > { %664 = vset.pattern.permute.xlu0 %v716_v5  ;;  %s608_s29 = sshll.u32 %s785_s28, 2  ;;  %s611_s7 = sshll.u32 %s785_s28, 3 }
  0x14   : > { %438 = vperm.xlu0 %664, %v289_v1   ;;  %s251_s6 = scalar_lea.vmem %s827_s2, %s608_s29  ;;  %s261_s10 = scalar_lea.vmem %s828_s3, %s611_s7 }
  0x15   : > { %v273_v10 = vld [vmem:[%s251_s6] sm:$0xff]  ;;  %v274_v11 = vld [vmem:[%s251_s6 + $0x8] sm:$0xff]  ;;  %v277_v41 = vld [vmem:[%s261_s10 + $0x10] sm:$0xff]  ;;  %s271_s13 = scalar_lea.vmem %s829_s4, %s611_s7 }
  0x16   : > { %v348_v18 = vrot.slane %v273_v10, %v347_v8  ;;  %v352_v19 = vrot.slane %v273_v10, %v351_v9  ;;  %v356_v20 = vrot.slane %v274_v11, %v347_v8  ;;  %v360_v21 = vrot.slane %v274_v11, %v351_v9  ;;  %v275_v34 = vld [vmem:[%s261_s10] sm:$0xff]  ;;  %v276_v40 = vld [vmem:[%s261_s10 + $0x8] sm:$0xff]  ;;  %v278_v42 = vld [vmem:[%s261_s10 + $0x18] sm:$0xff] }
  0x17   : > { %v300_v22 = vrot.slane %v273_v10, %v299_v12  ;;  %v304_v23 = vrot.slane %v273_v10, %v303_v13  ;;  %v308_v24 = vrot.slane %v274_v11, %v299_v12  ;;  %v312_v25 = vrot.slane %v274_v11, %v303_v13 }
  0x18   : > { %v396_v26 = vrot.slane %v273_v10, %v395_v14  ;;  %v400_v27 = vrot.slane %v273_v10, %v399_v15  ;;  %v404_v28 = vrot.slane %v274_v11, %v395_v14  ;;  %v408_v29 = vrot.slane %v274_v11, %v399_v15 }
  0x19   : > { %v444_v30 = vrot.slane %v273_v10, %v792_v16  ;;  %v448_v31 = vrot.slane %v273_v10, %v447_v17  ;;  %v452_v32 = vrot.slane %v274_v11, %v792_v16  ;;  %v456_v33 = vrot.slane %v274_v11, %v447_v17 }
  0x1a   : > { %v368_v35 = vrot.slane %v348_v18, %v347_v8  ;;  %v372_v36 = vrot.slane %v352_v19, %v347_v8  ;;  %v376_v37 = vrot.slane %v356_v20, %v347_v8  ;;  %v380_v38 = vrot.slane %v360_v21, %v347_v8 }
  0x1b   : > { %v320_v44 = vrot.slane %v300_v22, %v299_v12  ;;  %v324_v45 = vrot.slane %v304_v23, %v299_v12  ;;  %v328_v46 = vrot.slane %v308_v24, %v299_v12  ;;  %v332_v47 = vrot.slane %v312_v25, %v299_v12 }
  0x1c   : > { %v416_v48 = vrot.slane %v396_v26, %v395_v14  ;;  %v420_v49 = vrot.slane %v400_v27, %v395_v14  ;;  %v424_v50 = vrot.slane %v404_v28, %v395_v14  ;;  %v428_v51 = vrot.slane %v408_v29, %v395_v14 }
  0x1d   : > { %v464_v52 = vrot.slane %v444_v30, %v792_v16  ;;  %v468_v53 = vrot.slane %v448_v31, %v792_v16  ;;  %v472_v54 = vrot.slane %v452_v32, %v792_v16  ;;  %v476_v55 = vrot.slane %v456_v33, %v792_v16 }
  0x8a   : > { %v283_v39 = vpop.permute.xlu0 %282  ;;  %v343_v43 = vpop.permute.xlu1 %342 }
  0x8b   : > { %v285_v56 = vadd.f32 %v283_v39, %v275_v34  ;;  %v286_v57 = vadd.f32 %v283_v39, %v276_v40  ;;  %v287_v58 = vadd.f32 %v283_v39, %v277_v41  ;;  %v288_v59 = vadd.f32 %v283_v39, %v278_v42 }
  0x8c   : > { %v381_v60 = vmul.f32 %v368_v35, %v343_v43  ;;  %v382_v61 = vmul.f32 %v372_v36, %v343_v43  ;;  %v383_v62 = vmul.f32 %v376_v37, %v343_v43  ;;  %v384_v63 = vmul.f32 %v380_v38, %v343_v43 }
  0x8e   : > { %v293_v0 = vpop.permute.xlu0 %292 }
  0x8f   : > { %v333_v1 = vmul.f32 %v320_v44, %v293_v0  ;;  %v334_v2 = vmul.f32 %v324_v45, %v293_v0  ;;  %v335_v3 = vmul.f32 %v328_v46, %v293_v0  ;;  %v336_v4 = vmul.f32 %v332_v47, %v293_v0  ;;  %v391_v5 = vpop.permute.xlu1 %390 }
  0x90   : > { %v429_v6 = vmul.f32 %v416_v48, %v391_v5  ;;  %v430_v7 = vmul.f32 %v420_v49, %v391_v5  ;;  %v431_v8 = vmul.f32 %v424_v50, %v391_v5  ;;  %v432_v9 = vmul.f32 %v428_v51, %v391_v5 }
  0x91   : > { %v337_v10 = vadd.f32 %v333_v1, %v285_v56  ;;  %v338_v11 = vadd.f32 %v334_v2, %v286_v57  ;;  %v339_v12 = vadd.f32 %v335_v3, %v287_v58  ;;  %v340_v13 = vadd.f32 %v336_v4, %v288_v59 }
  0x93   : > { %v385_v14 = vadd.f32 %v381_v60, %v337_v10  ;;  %v386_v15 = vadd.f32 %v382_v61, %v338_v11  ;;  %v387_v16 = vadd.f32 %v383_v62, %v339_v12  ;;  %v388_v17 = vadd.f32 %v384_v63, %v340_v13  ;;  %v439_v18 = vpop.permute.xlu0 %438 }
  0x94   : > { %v477_v19 = vmul.f32 %v464_v52, %v439_v18  ;;  %v478_v20 = vmul.f32 %v468_v53, %v439_v18  ;;  %v479_v21 = vmul.f32 %v472_v54, %v439_v18  ;;  %v480_v22 = vmul.f32 %v476_v55, %v439_v18 }
  0x95   : > { %v433_v23 = vadd.f32 %v429_v6, %v385_v14  ;;  %v434_v24 = vadd.f32 %v430_v7, %v386_v15  ;;  %v435_v25 = vadd.f32 %v431_v8, %v387_v16  ;;  %v436_v26 = vadd.f32 %v432_v9, %v388_v17 }
  0x97   : > { %v481_v27 = vadd.f32 %v477_v19, %v433_v23  ;;  %v482_v28 = vadd.f32 %v478_v20, %v434_v24  ;;  %v483_v29 = vadd.f32 %v479_v21, %v435_v25  ;;  %v484_v30 = vadd.f32 %v480_v22, %v436_v26 }
  0x99   : > { %665 = vtanh.f32 %v481_v27 }
  0x9a   : > { %667 = vtanh.f32 %v482_v28 }
  0x9b   : > { %669 = vtanh.f32 %v483_v29 }
  0x9c   : > { %671 = vtanh.f32 %v484_v30 }
  0xa3   : > { %v666_v31 = vpop.eup %665 }
  0xa4   : > { %v668_v32 = vpop.eup %667  ;;  %489 = vst [vmem:[%s271_s13] sm:$0xff] %v666_v31 }
  0xa5   : > { %v670_v33 = vpop.eup %669  ;;  %490 = vst [vmem:[%s271_s13 + $0x8] sm:$0xff] %v668_v32 }
  0xa6   : > { %v672_v34 = vpop.eup %671  ;;  %491 = vst [vmem:[%s271_s13 + $0x10] sm:$0xff] %v670_v33 }
  0xa7   : > { %492 = vst [vmem:[%s271_s13 + $0x18] sm:$0xff] %v672_v34 }
  0xa8 PF: > { %s14_s19 = sadd.s32 1, %s711_s19   ;;  %s830_s15 = smov %s703_s17 }
  0xa9   : > { %p11_p7 = scmp.ge.s32.totalorder %s14_s19, 18   ;;  %s831_s16 = smov %s707_s18 }
  0xaa   : > { %s832_s17 = smov %s835_s20  ;;  %s833_s18 = smov %s839_s21 }
  0xab   :  { %13 = sbr.rel (!%p11_p7) target bundleno = 3 (0x3), region = 69 }

</bundles_post_ra>
